<compile_context>
chip_gen: v7x
topology: tpu7x:2x2x1
jax: 0.10.0
libtpu: 0.0.40
codegen_flags: <defaults>
</compile_context>

<pallas_src>
import functools

import jax
import jax.numpy as jnp
import numpy as np
from jax.experimental import pallas as pl
from jax.experimental.pallas import tpu as pltpu


def _linear_conf_attention_kernel(conf_ref, bw_ref, A_ref, Bz_ref, bp_ref, wb_ref,
                                  att_ref, out_ref, alpha_ref, *, approx_recip):
    BM, NC, M = conf_ref.shape
    B = Bz_ref.shape[0]

    conf = conf_ref[...].reshape(BM * NC, M)              # free leading-dim collapse

    # ---- boltz_lin: Linear(1, B) as a VPU broadcast (K=1, keep it off the MXU),
    #      then Softmax(dim=1) over the boltz basis (f32 VPU math on all generations) ----
    blw = bp_ref[0:1, :].reshape(1, 1, B)                 # boltz_lin weight row
    blb = bp_ref[1:2, :].reshape(1, 1, B)                 # boltz_lin bias row
    z = bw_ref[...][:, :, None] * blw + blb               # (BM, NC, B)
    z = z - jnp.max(z, axis=-1, keepdims=True)
    ez = jnp.exp(z)
    inv = pl.reciprocal(jnp.sum(ez, axis=-1, keepdims=True), approx=approx_recip)
    boltz_vec = (ez * inv).reshape(BM * NC, B).astype(A_ref.dtype)

    # ---- fp_linear + W folded into one affine map (folded on host):
    #      W(fp_linear(cat([conf, boltz]))) = conf @ A + boltz_vec @ Bz + W_b
    #      MXU operands in matmul_dtype (bf16 fast path), f32 accumulation. ----
    Wfps = (jnp.dot(conf, A_ref[...], preferred_element_type=jnp.float32)
            + jnp.dot(boltz_vec, Bz_ref[...], preferred_element_type=jnp.float32)
            + wb_ref[...])                                 # (BM*NC, M) f32

    # ---- attention logits on the MXU (N=1 matvec), then LeakyReLU(0.01) ----
    s = jnp.dot(Wfps, att_ref[...], preferred_element_type=jnp.float32)   # (BM*NC, 1)
    s = jnp.where(s > 0, s, 0.01 * s)

    # ---- per-molecule softmax over the NC conformers ----
    s2 = s.reshape(BM, NC)
    s2 = s2 - jnp.max(s2, axis=1, keepdims=True)
    es = jnp.exp(s2)
    inv2 = pl.reciprocal(jnp.sum(es, axis=1, keepdims=True), approx=approx_recip)
    alpha = es * inv2                                      # (BM, NC) lane-dense
    alpha_ref[...] = alpha

    # ---- weighted sum of W(new_fps) per molecule, then final_act = ReLU ----
    Wfps3 = Wfps.reshape(BM, NC, M)
    summed = jnp.sum(alpha[:, :, None] * Wfps3, axis=1)    # (BM, M)
    out_ref[...] = jnp.maximum(summed, 0.0)


def linear_conf_attention(conf_fps, boltzmann_weights, params, *,
                          mols_per_block=16, matmul_dtype=jnp.bfloat16,
                          approx_recip=None, vmem_limit_bytes=None):
    """Batched Pallas wrapper.

    conf_fps: (n_mols, n_confs, mol_basis) f32
    boltzmann_weights: (n_mols, n_confs, 1) or (n_mols, n_confs) f32
    Returns (output (n_mols, mol_basis) f32, alpha_i (n_mols, n_confs, 1) f32).
    """
    conf_fps = jnp.asarray(conf_fps, jnp.float32)
    n_mols, n_confs, M = conf_fps.shape
    B = params["boltz_w"].shape[1]

    # Lane-dense boltzmann weights (drop the trailing size-1 dim before the kernel).
    bw = jnp.reshape(jnp.asarray(boltzmann_weights, jnp.float32), (n_mols, n_confs))

    if approx_recip is None:
        approx_recip = jnp.dtype(matmul_dtype) != jnp.dtype(jnp.float32)

    # Host-side weight folding / packing (tiny, runs once under jit).
    A = (params["fp_w_fp"] @ params["W_w"]).astype(matmul_dtype)              # (M, M)
    Bz = (params["fp_w_bz"] @ params["W_w"]).astype(matmul_dtype)             # (B, M)
    boltz_pack = jnp.concatenate([params["boltz_w"], params["boltz_b"]], 0)   # (2, B) f32
    W_b = params["W_b"]                                                       # (1, M) f32
    att_col = params["att_w"].reshape(M, 1)                                   # (M, 1) f32 (MXU matvec rhs)

    conf_in = conf_fps.astype(matmul_dtype)   # no-op in f32 mode; halves conf DMA bytes in bf16 mode

    # Block / grid sizing.  No padding: the last block may be partial; Pallas masks the
    # edge reads/writes and per-molecule math is row-independent, so garbage pad rows
    # (which may go NaN in their own softmax lanes) never touch valid output rows.
    if n_mols <= mols_per_block:
        bm = n_mols
    else:
        bm = mols_per_block
        assert bm % 8 == 0, "mols_per_block must be a multiple of 8 (sublane tiling)"
    grid = (pl.cdiv(n_mols, bm),)

    kernel = functools.partial(_linear_conf_attention_kernel, approx_recip=approx_recip)

    cp_kwargs = dict(dimension_semantics=("parallel",))   # megacore sharding on v7x
    if vmem_limit_bytes is not None:                       # only needed if mol_basis scales
        cp_kwargs["vmem_limit_bytes"] = vmem_limit_bytes

    out, alpha = pl.pallas_call(
        kernel,
        out_shape=(jax.ShapeDtypeStruct((n_mols, M), jnp.float32),
                   jax.ShapeDtypeStruct((n_mols, n_confs), jnp.float32)),
        grid_spec=pltpu.PrefetchScalarGridSpec(
            num_scalar_prefetch=0,
            grid=grid,
            in_specs=[
                pl.BlockSpec((bm, n_confs, M), lambda i: (i, 0, 0)),  # conf block (streamed)
                pl.BlockSpec((bm, n_confs), lambda i: (i, 0)),        # boltz weights (lane-dense)
                pl.BlockSpec((M, M), lambda i: (0, 0)),               # A  (VMEM-resident)
                pl.BlockSpec((B, M), lambda i: (0, 0)),               # Bz (VMEM-resident)
                pl.BlockSpec((2, B), lambda i: (0, 0)),               # boltz_lin w/b (resident)
                pl.BlockSpec((1, M), lambda i: (0, 0)),               # W bias (resident)
                pl.BlockSpec((M, 1), lambda i: (0, 0)),               # att weight column (resident)
            ],
            out_specs=(
                pl.BlockSpec((bm, M), lambda i: (i, 0)),              # lane-dense output
                pl.BlockSpec((bm, n_confs), lambda i: (i, 0)),        # lane-dense alpha
            ),
        ),
        compiler_params=pltpu.CompilerParams(**cp_kwargs),
    )(conf_in, bw, A, Bz, boltz_pack, W_b, att_col)

    return out, alpha[..., None]


def _xavier_uniform(key, shape, gain=1.414):
    fan_out, fan_in = shape[0], shape[1]
    bound = gain * np.sqrt(6.0 / (fan_in + fan_out))
    return jax.random.uniform(key, shape, jnp.float32, -bound, bound)


def make_params(key, mol_basis, boltz_basis):
    """Deterministic synthetic parameters with the shapes LinearConfAttention implies."""
    ks = jax.random.split(key, 6)
    # boltz_lin: Linear(1, boltz_basis) -> stored as (1,B) weight / (1,B) bias
    boltz_w = jax.random.normal(ks[0], (1, boltz_basis), jnp.float32) * 0.5
    boltz_b = jax.random.normal(ks[1], (1, boltz_basis), jnp.float32) * 0.1
    # fp_linear: Linear(M+B, M, bias=False) -> stored transposed, split into conf / boltz parts
    fp_w = jax.random.normal(ks[2], (mol_basis + boltz_basis, mol_basis), jnp.float32) * 0.1
    fp_w_fp = fp_w[:mol_basis]
    fp_w_bz = fp_w[mol_basis:]
    # W: Linear(M, M), xavier(gain=1.414) -> stored transposed
    W_w = _xavier_uniform(ks[3], (mol_basis, mol_basis)).T
    W_b = jax.random.normal(ks[4], (1, mol_basis), jnp.float32) * 0.05
    # att_weight: Parameter (1, mol_basis), xavier(gain=1.414)
    att_w = _xavier_uniform(ks[5], (1, mol_basis))
    return dict(boltz_w=boltz_w, boltz_b=boltz_b, fp_w_fp=fp_w_fp, fp_w_bz=fp_w_bz,
                W_w=W_w, W_b=W_b, att_w=att_w)


def reference(conf_fps, bw, p):
    """Pure-JAX f32 reference mirroring the torch forward (unfolded weights), batched over mols."""
    z = bw @ p["boltz_w"] + p["boltz_b"]                          # (n_mols, NC, B)
    boltz_vec = jax.nn.softmax(z, axis=-1)
    new_fps = conf_fps @ p["fp_w_fp"] + boltz_vec @ p["fp_w_bz"]  # (n_mols, NC, M)
    Wfps = new_fps @ p["W_w"] + p["W_b"]                          # (n_mols, NC, M)
    s = jnp.einsum("bcm,m->bc", Wfps, p["att_w"][0])              # (n_mols, NC)
    s = jnp.where(s > 0, s, 0.01 * s)                             # LeakyReLU(0.01)
    alpha = jax.nn.softmax(s, axis=-1)[..., None]                 # (n_mols, NC, 1)
    out = jnp.maximum((alpha * Wfps).sum(axis=1), 0.0)            # final_act = ReLU
    return out, alpha


if __name__ == "__main__":
    # n_mols deliberately NOT a multiple of the block size to exercise the no-pad partial
    # edge block path.
    n_mols, n_confs, mol_basis, boltz_basis = 50, 8, 128, 16

    key = jax.random.PRNGKey(0)
    k_fp, k_bw, k_par = jax.random.split(key, 3)
    conf_fps = jax.random.normal(k_fp, (n_mols, n_confs, mol_basis), jnp.float32)
    boltzmann_weights = jax.nn.softmax(
        jax.random.normal(k_bw, (n_mols, n_confs), jnp.float32), axis=-1)[..., None]
    params = make_params(k_par, mol_basis, boltz_basis)

    ref_out, ref_alpha = reference(conf_fps, boltzmann_weights, params)

    # 1) Strict f32 path: tight correctness gate vs the (unfolded) torch-equivalent reference.
    #    (Tolerance slightly loose vs bit-exact because fp_linear@W is folded on the host,
    #    which reorders f32 accumulation.)
    run_f32 = jax.jit(functools.partial(linear_conf_attention, matmul_dtype=jnp.float32))
    out32, alpha32 = jax.block_until_ready(run_f32(conf_fps, boltzmann_weights, params))
    np.testing.assert_allclose(np.asarray(out32), np.asarray(ref_out), rtol=2e-4, atol=2e-5)
    np.testing.assert_allclose(np.asarray(alpha32), np.asarray(ref_alpha), rtol=2e-4, atol=5e-6)

    # 2) bf16-MXU fast path (default): single-pass MXU, half the conf DMA bytes, approx
    #    reciprocal on the EUP.  Sanity-checked with bf16-appropriate tolerances.
    run_bf16 = jax.jit(functools.partial(linear_conf_attention, matmul_dtype=jnp.bfloat16))
    out16, alpha16 = jax.block_until_ready(run_bf16(conf_fps, boltzmann_weights, params))
    np.testing.assert_allclose(np.asarray(out16), np.asarray(ref_out), rtol=1e-1, atol=1e-1)
    np.testing.assert_allclose(np.asarray(alpha16), np.asarray(ref_alpha), rtol=1e-1, atol=2e-2)

    assert out32.shape == (n_mols, mol_basis) and alpha32.shape == (n_mols, n_confs, 1)
    assert out16.shape == (n_mols, mol_basis) and alpha16.shape == (n_mols, n_confs, 1)
    print("KERNEL_OK")
</pallas_src>

<mosaic_0001>
module attributes {stable_mosaic.version = 11 : i64} {
  func.func @_linear_conf_attention_kernel(%arg0: i32, %arg1: memref<16x8x128xf32, #tpu.memory_space<vmem>>, %arg2: memref<16x8xf32, #tpu.memory_space<vmem>>, %arg3: memref<128x128xf32, #tpu.memory_space<vmem>>, %arg4: memref<16x128xf32, #tpu.memory_space<vmem>>, %arg5: memref<2x16xf32, #tpu.memory_space<vmem>>, %arg6: memref<1x128xf32, #tpu.memory_space<vmem>>, %arg7: memref<128x1xf32, #tpu.memory_space<vmem>>, %arg8: memref<16x128xf32, #tpu.memory_space<vmem>>, %arg9: memref<16x8xf32, #tpu.memory_space<vmem>>) attributes {dimension_semantics = [#tpu.dimension_semantics<parallel>], iteration_bounds = array<i64: 4>, scalar_prefetch = 0 : i64, scratch_operands = 0 : i64, tpu.core_type = #tpu.core_type<tc>, window_params = [{transform_indices = @transform_0, window_bounds = array<i64: 16, 8, 128>}, {transform_indices = @transform_1, window_bounds = array<i64: 16, 8>}, {pipeline_mode = #tpu.pipeline_mode<synchronous>, transform_indices = @transform_2, window_bounds = array<i64: 128, 128>}, {pipeline_mode = #tpu.pipeline_mode<synchronous>, transform_indices = @transform_3, window_bounds = array<i64: 16, 128>}, {pipeline_mode = #tpu.pipeline_mode<synchronous>, transform_indices = @transform_4, window_bounds = array<i64: 2, 16>}, {pipeline_mode = #tpu.pipeline_mode<synchronous>, transform_indices = @transform_5, window_bounds = array<i64: 1, 128>}, {pipeline_mode = #tpu.pipeline_mode<synchronous>, transform_indices = @transform_6, window_bounds = array<i64: 128, 1>}, {transform_indices = @transform_7, window_bounds = array<i64: 16, 128>}, {transform_indices = @transform_8, window_bounds = array<i64: 16, 8>}]} {
    %c0 = arith.constant 0 : index
    %c0_0 = arith.constant 0 : index
    %c0_1 = arith.constant 0 : index
    %0 = vector.load %arg1[%c0, %c0_0, %c0_1] : memref<16x8x128xf32, #tpu.memory_space<vmem>>, vector<16x8x128xf32>
    %1 = vector.shape_cast %0 : vector<16x8x128xf32> to vector<128x128xf32>
    %c0_2 = arith.constant 0 : index
    %c0_3 = arith.constant 0 : index
    %2 = vector.load %arg5[%c0_2, %c0_3] : memref<2x16xf32, #tpu.memory_space<vmem>>, vector<1x16xf32>
    %3 = vector.shape_cast %2 : vector<1x16xf32> to vector<1x1x16xf32>
    %c1 = arith.constant 1 : index
    %c0_4 = arith.constant 0 : index
    %4 = vector.load %arg5[%c1, %c0_4] : memref<2x16xf32, #tpu.memory_space<vmem>>, vector<1x16xf32>
    %5 = vector.shape_cast %4 : vector<1x16xf32> to vector<1x1x16xf32>
    %c0_5 = arith.constant 0 : index
    %c0_6 = arith.constant 0 : index
    %6 = vector.load %arg2[%c0_5, %c0_6] : memref<16x8xf32, #tpu.memory_space<vmem>>, vector<16x8xf32>
    %7 = vector.shape_cast %6 : vector<16x8xf32> to vector<16x8x1xf32>
    %8 = vector.broadcast %7 : vector<16x8x1xf32> to vector<16x8x16xf32>
    %9 = vector.broadcast %3 : vector<1x1x16xf32> to vector<16x8x16xf32>
    %10 = arith.mulf %8, %9 : vector<16x8x16xf32>
    %11 = vector.broadcast %5 : vector<1x1x16xf32> to vector<16x8x16xf32>
    %12 = arith.addf %10, %11 : vector<16x8x16xf32>
    %cst = arith.constant dense<0xFF800000> : vector<16x8xf32>
    %13 = vector.multi_reduction <maximumf>, %12, %cst [2] : vector<16x8x16xf32> to vector<16x8xf32>
    %14 = vector.shape_cast %13 : vector<16x8xf32> to vector<16x8x1xf32>
    %15 = vector.broadcast %14 : vector<16x8x1xf32> to vector<16x8x16xf32>
    %16 = arith.subf %12, %15 : vector<16x8x16xf32>
    %17 = math.exp %16 : vector<16x8x16xf32>
    %cst_7 = arith.constant dense<0.000000e+00> : vector<16x8xf32>
    %18 = vector.multi_reduction <add>, %17, %cst_7 [2] : vector<16x8x16xf32> to vector<16x8xf32>
    %19 = vector.shape_cast %18 : vector<16x8xf32> to vector<16x8x1xf32>
    %20 = tpu.reciprocal %19 : vector<16x8x1xf32> -> vector<16x8x1xf32>
    %21 = vector.broadcast %20 : vector<16x8x1xf32> to vector<16x8x16xf32>
    %22 = arith.mulf %17, %21 : vector<16x8x16xf32>
    %23 = vector.shape_cast %22 : vector<16x8x16xf32> to vector<128x16xf32>
    %c0_8 = arith.constant 0 : index
    %c0_9 = arith.constant 0 : index
    %24 = vector.load %arg3[%c0_8, %c0_9] : memref<128x128xf32, #tpu.memory_space<vmem>>, vector<128x128xf32>
    %cst_10 = arith.constant dense<0.000000e+00> : vector<128x128xf32>
    %25 = tpu.matmul %1, %24, %cst_10 {dimension_numbers = #tpu.dot_dimension_numbers<[1], [0], [0], [1], [0, 0, 1, 1], [], []>} : vector<128x128xf32>, vector<128x128xf32>, vector<128x128xf32> -> vector<128x128xf32>
    %c0_11 = arith.constant 0 : index
    %c0_12 = arith.constant 0 : index
    %26 = vector.load %arg4[%c0_11, %c0_12] : memref<16x128xf32, #tpu.memory_space<vmem>>, vector<16x128xf32>
    %cst_13 = arith.constant dense<0.000000e+00> : vector<128x128xf32>
    %27 = tpu.matmul %23, %26, %cst_13 {dimension_numbers = #tpu.dot_dimension_numbers<[1], [0], [0], [1], [0, 0, 1, 1], [], []>} : vector<128x16xf32>, vector<16x128xf32>, vector<128x128xf32> -> vector<128x128xf32>
    %28 = arith.addf %25, %27 : vector<128x128xf32>
    %c0_14 = arith.constant 0 : index
    %c0_15 = arith.constant 0 : index
    %29 = vector.load %arg6[%c0_14, %c0_15] : memref<1x128xf32, #tpu.memory_space<vmem>>, vector<1x128xf32>
    %30 = vector.broadcast %29 : vector<1x128xf32> to vector<128x128xf32>
    %31 = arith.addf %28, %30 : vector<128x128xf32>
    %c0_16 = arith.constant 0 : index
    %c0_17 = arith.constant 0 : index
    %32 = vector.load %arg7[%c0_16, %c0_17] : memref<128x1xf32, #tpu.memory_space<vmem>>, vector<128x1xf32>
    %cst_18 = arith.constant dense<0.000000e+00> : vector<128x1xf32>
    %33 = tpu.matmul %31, %32, %cst_18 {dimension_numbers = #tpu.dot_dimension_numbers<[1], [0], [0], [1], [0, 0, 1, 1], [], []>} : vector<128x128xf32>, vector<128x1xf32>, vector<128x1xf32> -> vector<128x1xf32>
    %cst_19 = arith.constant 0.000000e+00 : f32
    %34 = vector.broadcast %cst_19 : f32 to vector<128x1xf32>
    %35 = arith.cmpf ogt, %33, %34 : vector<128x1xf32>
    %cst_20 = arith.constant 0.00999999977 : f32
    %36 = vector.broadcast %cst_20 : f32 to vector<128x1xf32>
    %37 = arith.mulf %36, %33 : vector<128x1xf32>
    %38 = arith.select %35, %33, %37 : vector<128x1xi1>, vector<128x1xf32>
    %39 = vector.shape_cast %38 : vector<128x1xf32> to vector<16x8xf32>
    %cst_21 = arith.constant dense<0xFF800000> : vector<16xf32>
    %40 = vector.multi_reduction <maximumf>, %39, %cst_21 [1] : vector<16x8xf32> to vector<16xf32>
    %41 = vector.shape_cast %40 : vector<16xf32> to vector<16x1xf32>
    %42 = vector.broadcast %41 : vector<16x1xf32> to vector<16x8xf32>
    %43 = arith.subf %39, %42 : vector<16x8xf32>
    %44 = math.exp %43 : vector<16x8xf32>
    %cst_22 = arith.constant dense<0.000000e+00> : vector<16xf32>
    %45 = vector.multi_reduction <add>, %44, %cst_22 [1] : vector<16x8xf32> to vector<16xf32>
    %46 = vector.shape_cast %45 : vector<16xf32> to vector<16x1xf32>
    %47 = tpu.reciprocal %46 : vector<16x1xf32> -> vector<16x1xf32>
    %48 = vector.broadcast %47 : vector<16x1xf32> to vector<16x8xf32>
    %49 = arith.mulf %44, %48 : vector<16x8xf32>
    %c0_23 = arith.constant 0 : index
    %c0_24 = arith.constant 0 : index
    %50 = vector.load %arg9[%c0_23, %c0_24] : memref<16x8xf32, #tpu.memory_space<vmem>>, vector<16x8xf32>
    tpu.vector_store %arg9[%c0_23, %c0_24], %49 {strides = array<i32>} : memref<16x8xf32, #tpu.memory_space<vmem>>, vector<16x8xf32>,
    %51 = vector.shape_cast %31 : vector<128x128xf32> to vector<16x8x128xf32>
    %52 = vector.shape_cast %49 : vector<16x8xf32> to vector<16x8x1xf32>
    %53 = vector.broadcast %52 : vector<16x8x1xf32> to vector<16x8x128xf32>
    %54 = arith.mulf %53, %51 : vector<16x8x128xf32>
    %cst_25 = arith.constant dense<0.000000e+00> : vector<16x128xf32>
    %55 = vector.multi_reduction <add>, %54, %cst_25 [1] : vector<16x8x128xf32> to vector<16x128xf32>
    %cst_26 = arith.constant 0.000000e+00 : f32
    %56 = vector.broadcast %cst_26 : f32 to vector<16x128xf32>
    %57 = arith.maximumf %55, %56 : vector<16x128xf32>
    %c0_27 = arith.constant 0 : index
    %c0_28 = arith.constant 0 : index
    %58 = vector.load %arg8[%c0_27, %c0_28] : memref<16x128xf32, #tpu.memory_space<vmem>>, vector<16x128xf32>
    tpu.vector_store %arg8[%c0_27, %c0_28], %57 {strides = array<i32>} : memref<16x128xf32, #tpu.memory_space<vmem>>, vector<16x128xf32>,
    return
  }
  func.func @transform_0(%arg0: i32) -> (i32, i32, i32) {
    %c0_i32 = arith.constant 0 : i32
    %c0_i32_0 = arith.constant 0 : i32
    %c0_i32_1 = arith.constant 0 : i32
    return %arg0, %c0_i32, %c0_i32_0 : i32, i32, i32
  }
  func.func @transform_1(%arg0: i32) -> (i32, i32) {
    %c0_i32 = arith.constant 0 : i32
    %c0_i32_0 = arith.constant 0 : i32
    return %arg0, %c0_i32 : i32, i32
  }
  func.func @transform_2(%arg0: i32) -> (i32, i32) {
    %c0_i32 = arith.constant 0 : i32
    %c0_i32_0 = arith.constant 0 : i32
    %c0_i32_1 = arith.constant 0 : i32
    return %c0_i32, %c0_i32_0 : i32, i32
  }
  func.func @transform_3(%arg0: i32) -> (i32, i32) {
    %c0_i32 = arith.constant 0 : i32
    %c0_i32_0 = arith.constant 0 : i32
    %c0_i32_1 = arith.constant 0 : i32
    return %c0_i32, %c0_i32_0 : i32, i32
  }
  func.func @transform_4(%arg0: i32) -> (i32, i32) {
    %c0_i32 = arith.constant 0 : i32
    %c0_i32_0 = arith.constant 0 : i32
    %c0_i32_1 = arith.constant 0 : i32
    return %c0_i32, %c0_i32_0 : i32, i32
  }
  func.func @transform_5(%arg0: i32) -> (i32, i32) {
    %c0_i32 = arith.constant 0 : i32
    %c0_i32_0 = arith.constant 0 : i32
    %c0_i32_1 = arith.constant 0 : i32
    return %c0_i32, %c0_i32_0 : i32, i32
  }
  func.func @transform_6(%arg0: i32) -> (i32, i32) {
    %c0_i32 = arith.constant 0 : i32
    %c0_i32_0 = arith.constant 0 : i32
    %c0_i32_1 = arith.constant 0 : i32
    return %c0_i32, %c0_i32_0 : i32, i32
  }
  func.func @transform_7(%arg0: i32) -> (i32, i32) {
    %c0_i32 = arith.constant 0 : i32
    %c0_i32_0 = arith.constant 0 : i32
    return %arg0, %c0_i32 : i32, i32
  }
  func.func @transform_8(%arg0: i32) -> (i32, i32) {
    %c0_i32 = arith.constant 0 : i32
    %c0_i32_0 = arith.constant 0 : i32
    return %arg0, %c0_i32 : i32, i32
  }
}

</mosaic_0001>

<bundles_post_ra>
// kernel: linear_conf_attention.1
= control target key start
LH: loop header
LB: loop body
LE: loop exit
PB: predicated region body
PF: predicated region fallthrough
CT: control target
= control target key end

     0   :  { %s4114_s0 = inlined_call_operand.vmem [shape: f32[50,8,128], index: 0, kind: input, shape index: {}]   ;;  %s4115_s1 = inlined_call_operand.vmem [shape: f32[50,8], index: 1, kind: input, shape index: {}]   ;;  %s4116_s2 = inlined_call_operand.vmem [shape: f32[128,128], index: 2, kind: input, shape index: {}]   ;;  %s4117_s3 = inlined_call_operand.vmem [shape: f32[16,128], index: 3, kind: input, shape index: {}]   ;;  %s4118_s4 = inlined_call_operand.vmem [shape: f32[2,16], index: 4, kind: input, shape index: {}]   ;;  %s4119_s5 = inlined_call_operand.vmem [shape: f32[1,128], index: 5, kind: input, shape index: {}]   ;;  %s4120_s6 = inlined_call_operand.vmem [shape: f32[128,1], index: 6, kind: input, shape index: {}]   ;;  %s4121_s7 = inlined_call_operand.hbm [shape: f32[50,128], index: 7, kind: output, shape index: {0}]   ;;  %s4122_s8 = inlined_call_operand.vmem [shape: f32[50,8], index: 8, kind: output, shape index: {1}]  }
   0x1   :  { %4123 = sst [smem:[#allocation6_spill]] %s4114_s0 }
   0x2   :  { %14 = vsyncpa [#allocation3], 0 }
   0x3   :  { %16 = vsyncpa [#allocation3 + $0x1], 0  ;;  %s3223_s27 = smov 0   ;;  %s3225_s28 = smov 0  }
   0x4   :  { %s3227_s29 = smov 0   ;;  %s3229_s30 = smov 0  }
   0x5 LB: > { %s3244_s9 = sadd.s32 4294967295, %s3140_s30   ;;  %s2476_s10 = sadd.s32 4294967294, %s3140_s30   ;;  %s3140_s30 = sphi %s3229_s30, %s4130_s30   ;;  %s3136_s29 = sphi %s3227_s29, %s4129_s29   ;;  %s3132_s28 = sphi %s3225_s28, %s4128_s28   ;;  %s3128_s27 = sphi %s3223_s27, %s4127_s27  }
   0x6   : > { %s3248_s11 = sadd.s32 1, %s3140_s30   ;;  %s186_s12 = sadd.s32 1, %s3136_s29 }
   0x7   : > { %s183_s13 = ssub.s32 %s3140_s30, %s3248_s11  ;;  %p196_p0 = scmp.ne.s32.totalorder %s3136_s29, %s3132_s28 }
   0x8   : > { %p184_p1 = scmp.eq.s32.totalorder %s183_s13, 0  ;;  %p197_p2 = scmp.eq.s32.totalorder %s3244_s9, 3 }
   0x9   : > { %p202_p3 = scmp.ne.s32.totalorder %s3132_s28, %s3128_s27  ;;  %p203_p4 = scmp.eq.s32.totalorder %s2476_s10, 3 }
   0xa   : > { %s3259_s14 = scalar_select %p184_p1, %s3136_s29, %s186_s12  }
   0xb   : > { %p3261_p5 = por %p197_p2, %p196_p0  ;;  %p3265_p6 = por %p203_p4, %p202_p3 }
   0xc   : > { %p2479_p7 = scmp.ge.s32.totalorder %s3140_s30, 1  ;;  %p296_p8 = scmp.lt.s32.totalorder %s3140_s30, 5 }
   0xe   : > { %p297_p9 = pnand %p2479_p7, %p296_p8 }
   0xf   : > { %s3272_s17 = sshll.u32 (!%p297_p9), %s3244_s9, 1  ;;  %v405_v0 = vlaneseq (!%p297_p9)  ;;  %v3316_v30 = vld [vmem:[%s4118_s4] ss:$0 sm:$0xff] (!%p297_p9)  ;;  %v3321_v33 = vld [vmem:[%s4118_s4 + $0x1] ss:$0 sm:$0xff] (!%p297_p9)  ;;  %vm557_vm0 = vcmask (!%p297_p9), 130048  }
  0x10   : > { %300 = sbr.rel (%p297_p9) target bundleno = 1836 (0x72c), region = 48  ;;  %p366_p10 = scmp.lt.s32.totalorder (!%p297_p9), %s3272_s17, 6 }
  0x11   : > { %v406_v1 = vshrl.u32 (!%p297_p9), %v405_v0, 7  ;;  %v1387_v2 = vand.u32 (!%p297_p9), 127, %v405_v0  ;;  %s3603_s23 = sshll.u32 (!%p297_p9), %s3244_s9, 4  ;;  %s4126_s0 = sld [smem:[#allocation6_spill]] (!%p297_p9) }
  0x12   : > { %p352_p11 = scmp.lt.s32.totalorder (!%p297_p9), %s3603_s23, 49  ;;  %s338_s20 = sand.u32 (!%p297_p9), 1, %s3132_s28  }
  0x13   : > { %v3276_v3 = vsub.s32 (!%p297_p9), 0, %v406_v1  ;;  %v3278_v4 = vsub.s32 (!%p297_p9), %v1387_v2, %v406_v1  ;;  %v3280_v5 = vsub.s32 (!%p297_p9), 2, %v406_v1  ;;  %v3285_v6 = vsub.s32 (!%p297_p9), 1, %v406_v1 }
  0x14   : > { %v3287_v7 = vsub.s32 (!%p297_p9), 3, %v406_v1  ;;  %v3293_v13 = vsub.s32 (!%p297_p9), 4, %v406_v1  ;;  %v3295_v14 = vsub.s32 (!%p297_p9), 5, %v406_v1  ;;  %v3299_v17 = vsub.s32 (!%p297_p9), 6, %v406_v1 }
  0x15   : > { %v3301_v18 = vsub.s32 (!%p297_p9), 7, %v406_v1 }
  0x17   : > { %s367_s18 = scalar_select %p366_p10, %s3272_s17, 6 }
  0x18   : > { %s353_s12 = scalar_select %p352_p11, %s3603_s23, 49 }
  0x19   : > { %s2485_s19 = sshll.u32 %s367_s18, 3  ;;  %s2199_s26 = ssub.s32 (%p3261_p5), 7, %s3272_s17 }
  0x1a   : > { %s369_s22 = scalar_lea.vmem %s4115_s1, %s2485_s19  ;;  %s2483_s21 = sshll.u32 %s353_s12, 3 }
  0x1b   : > { %v403_v8 = vld [vmem:[%s369_s22] sm:$0xff]  ;;  %v404_v21 = vld [vmem:[%s369_s22 + $0x8] sm:$0xff]  ;;  %s3637_s25 = scalar_lea.vmem %s4126_s0, %s2483_s21  ;;  %s3970_s21 = sshll.u32 %s338_s20, 4 }
  0x1c   : > { %v408_v9 = vrot.slane %v403_v8, %v3276_v3  ;;  %v422_v10 = vrot.slane %v403_v8, %v3280_v5  ;;  %v415_v11 = vrot.slane %v403_v8, %v3285_v6  ;;  %v429_v12 = vrot.slane %v403_v8, %v3287_v7  ;;  %s3982_s22 = scalar_lea.vmem [#allocation4], %s3970_s21   ;;  %s4009_s24 = scalar_lea.vmem [#allocation2], %s3970_s21 }
  0x1d   : > { %v436_v15 = vrot.slane %v403_v8, %v3293_v13  ;;  %v443_v16 = vrot.slane %v403_v8, %v3295_v14  ;;  %v450_v19 = vrot.slane %v403_v8, %v3299_v17  ;;  %v457_v20 = vrot.slane %v403_v8, %v3301_v18  ;;  %p2200_p12 = scmp.lt.s32.totalorder (%p3261_p5), %s2199_s26, 2 }
  0x1e   : > { %410 = vbcast.lane.b32.xlu0 %v408_v9, 256  ;;  %424 = vbcast.lane.b32.xlu1 %v422_v10, 256  ;;  %v464_v22 = vrot.slane %v404_v21, %v3276_v3  ;;  %v471_v23 = vrot.slane %v404_v21, %v3285_v6  ;;  %v478_v24 = vrot.slane %v404_v21, %v3280_v5 }
  0x1f   : > { %v485_v25 = vrot.slane %v404_v21, %v3287_v7  ;;  %v492_v26 = vrot.slane %v404_v21, %v3293_v13  ;;  %v499_v27 = vrot.slane %v404_v21, %v3295_v14  ;;  %v506_v28 = vrot.slane %v404_v21, %v3299_v17 }
  0x20   : > { %v513_v29 = vrot.slane %v404_v21, %v3301_v18 }
  0x22   : > { %417 = vbcast.lane.b32.xlu0 %v415_v11, 256  ;;  %431 = vbcast.lane.b32.xlu1 %v429_v12, 256 }
  0x26   : > { %438 = vbcast.lane.b32.xlu0 %v436_v15, 256  ;;  %445 = vbcast.lane.b32.xlu1 %v443_v16, 256 }
  0x2a   : > { %452 = vbcast.lane.b32.xlu0 %v450_v19, 256  ;;  %459 = vbcast.lane.b32.xlu1 %v457_v20, 256 }
  0x2e   : > { %466 = vbcast.lane.b32.xlu0 %v464_v22, 256  ;;  %473 = vbcast.lane.b32.xlu1 %v471_v23, 256 }
  0x32   : > { %480 = vbcast.lane.b32.xlu0 %v478_v24, 256  ;;  %487 = vbcast.lane.b32.xlu1 %v485_v25, 256 }
  0x36   : > { %494 = vbcast.lane.b32.xlu0 %v492_v26, 256  ;;  %501 = vbcast.lane.b32.xlu1 %v499_v27, 256 }
  0x3a   : > { %508 = vbcast.lane.b32.xlu0 %v506_v28, 256  ;;  %515 = vbcast.lane.b32.xlu1 %v513_v29, 256 }
  0x90   : > { %v411_v31 = vpop.permute.xlu0 %410  ;;  %v425_v32 = vpop.permute.xlu1 %424 }
  0x91   : > { %v521_v34 = vmul.f32 %v3316_v30, %v411_v31  ;;  %v523_v35 = vmul.f32 %v3316_v30, %v425_v32 }
  0x93   : > { %v3326_v36 = vadd.f32 %v3321_v33, %v521_v34  ;;  %v3329_v37 = vadd.f32 %v3321_v33, %v523_v35 }
  0x94   : > { %v418_v38 = vpop.permute.xlu0 %417  ;;  %v432_v39 = vpop.permute.xlu1 %431 }
  0x95   : > { %v522_v40 = vmul.f32 %v3316_v30, %v418_v38  ;;  %v558_v41 = vsel %vm557_vm0, %v3326_v36, -inf  ;;  %v524_v42 = vmul.f32 %v3316_v30, %v432_v39  ;;  %v564_v43 = vsel %vm557_vm0, %v3329_v37, -inf }
  0x96   : > { %559 = vmax.xlane.f32.xlu0 %v558_v41 }
  0x97   : > { %v3338_v44 = vadd.f32 %v3321_v33, %v522_v40  ;;  %v3341_v45 = vadd.f32 %v3321_v33, %v524_v42 }
  0x98   : > { %v439_v46 = vpop.permute.xlu0 %438  ;;  %v446_v47 = vpop.permute.xlu1 %445 }
  0x99   : > { %v525_v48 = vmul.f32 %v3316_v30, %v439_v46  ;;  %v561_v49 = vsel %vm557_vm0, %v3338_v44, -inf  ;;  %v526_v50 = vmul.f32 %v3316_v30, %v446_v47  ;;  %v567_v51 = vsel %vm557_vm0, %v3341_v45, -inf }
  0x9a   : > { %565 = vmax.xlane.f32.xlu0 %v564_v43  ;;  %562 = vmax.xlane.f32.xlu1 %v561_v49 }
  0x9b   : > { %v3350_v52 = vadd.f32 %v3321_v33, %v525_v48  ;;  %v3353_v53 = vadd.f32 %v3321_v33, %v526_v50 }
  0x9c   : > { %v453_v54 = vpop.permute.xlu0 %452  ;;  %v460_v55 = vpop.permute.xlu1 %459 }
  0x9d   : > { %v527_v56 = vmul.f32 %v3316_v30, %v453_v54  ;;  %v570_v57 = vsel %vm557_vm0, %v3350_v52, -inf  ;;  %v528_v58 = vmul.f32 %v3316_v30, %v460_v55  ;;  %v573_v59 = vsel %vm557_vm0, %v3353_v53, -inf }
  0x9e   : > { %568 = vmax.xlane.f32.xlu0 %v567_v51  ;;  %571 = vmax.xlane.f32.xlu1 %v570_v57 }
  0x9f   : > { %v3362_v60 = vadd.f32 %v3321_v33, %v527_v56  ;;  %v3365_v61 = vadd.f32 %v3321_v33, %v528_v58 }
  0xa0   : > { %v467_v62 = vpop.permute.xlu0 %466  ;;  %v474_v63 = vpop.permute.xlu1 %473 }
  0xa1   : > { %v529_v0 = vmul.f32 %v3316_v30, %v467_v62  ;;  %v576_v1 = vsel %vm557_vm0, %v3362_v60, -inf  ;;  %v530_v2 = vmul.f32 %v3316_v30, %v474_v63  ;;  %v579_v8 = vsel %vm557_vm0, %v3365_v61, -inf }
  0xa2   : > { %574 = vmax.xlane.f32.xlu0 %v573_v59  ;;  %577 = vmax.xlane.f32.xlu1 %v576_v1 }
  0xa3   : > { %v3374_v9 = vadd.f32 %v3321_v33, %v529_v0  ;;  %v3377_v10 = vadd.f32 %v3321_v33, %v530_v2 }
  0xa4   : > { %v481_v11 = vpop.permute.xlu0 %480  ;;  %v488_v12 = vpop.permute.xlu1 %487 }
  0xa5   : > { %v531_v15 = vmul.f32 %v3316_v30, %v481_v11  ;;  %v582_v16 = vsel %vm557_vm0, %v3374_v9, -inf  ;;  %v532_v19 = vmul.f32 %v3316_v30, %v488_v12  ;;  %v585_v20 = vsel %vm557_vm0, %v3377_v10, -inf }
  0xa6   : > { %580 = vmax.xlane.f32.xlu0 %v579_v8  ;;  %583 = vmax.xlane.f32.xlu1 %v582_v16 }
  0xa7   : > { %v3386_v21 = vadd.f32 %v3321_v33, %v531_v15  ;;  %v3389_v22 = vadd.f32 %v3321_v33, %v532_v19 }
  0xa8   : > { %v495_v23 = vpop.permute.xlu0 %494  ;;  %v502_v24 = vpop.permute.xlu1 %501 }
  0xa9   : > { %v533_v25 = vmul.f32 %v3316_v30, %v495_v23  ;;  %v588_v26 = vsel %vm557_vm0, %v3386_v21, -inf  ;;  %v534_v27 = vmul.f32 %v3316_v30, %v502_v24  ;;  %v591_v28 = vsel %vm557_vm0, %v3389_v22, -inf }
  0xaa   : > { %586 = vmax.xlane.f32.xlu0 %v585_v20  ;;  %589 = vmax.xlane.f32.xlu1 %v588_v26 }
  0xab   : > { %v3398_v29 = vadd.f32 %v3321_v33, %v533_v25  ;;  %v3401_v31 = vadd.f32 %v3321_v33, %v534_v27 }
  0xac   : > { %v509_v32 = vpop.permute.xlu0 %508  ;;  %v516_v34 = vpop.permute.xlu1 %515 }
  0xad   : > { %v535_v35 = vmul.f32 %v3316_v30, %v509_v32  ;;  %v594_v38 = vsel %vm557_vm0, %v3398_v29, -inf  ;;  %v536_v39 = vmul.f32 %v3316_v30, %v516_v34  ;;  %v597_v40 = vsel %vm557_vm0, %v3401_v31, -inf }
  0xae   : > { %592 = vmax.xlane.f32.xlu0 %v591_v28  ;;  %595 = vmax.xlane.f32.xlu1 %v594_v38 }
  0xaf   : > { %v3410_v41 = vadd.f32 %v3321_v33, %v535_v35  ;;  %v3413_v42 = vadd.f32 %v3321_v33, %v536_v39 }
  0xb1   : > { %v600_v43 = vsel %vm557_vm0, %v3410_v41, -inf  ;;  %v603_v46 = vsel %vm557_vm0, %v3413_v42, -inf }
  0xb2   : > { %598 = vmax.xlane.f32.xlu0 %v597_v40  ;;  %601 = vmax.xlane.f32.xlu1 %v600_v43 }
  0xb6   : > { %604 = vmax.xlane.f32.xlu0 %v603_v46 }
 0x123   : > { %v560_v30 = vpop.xlane.xlu0 %559 }
 0x124   : > { %v606_v47 = vsub.f32 %v3326_v36, %v560_v30 }
 0x126   : > { %v622_v48 = vmul.f32 1.442695, %v606_v47 }
 0x127   : > { %v563_v49 = vpop.xlane.xlu1 %562  ;;  %v566_v50 = vpop.xlane.xlu0 %565 }
 0x128   : > { %2946 = vpow2.f32 %v622_v48  ;;  %v607_v51 = vsub.f32 %v3338_v44, %v563_v49  ;;  %v608_v33 = vsub.f32 %v3329_v37, %v566_v50 }
 0x12a   : > { %v624_v54 = vmul.f32 1.442695, %v607_v51  ;;  %v626_v55 = vmul.f32 1.442695, %v608_v33 }
 0x12b   : > { %v572_v56 = vpop.xlane.xlu1 %571  ;;  %v569_v57 = vpop.xlane.xlu0 %568 }
 0x12c   : > { %2948 = vpow2.f32 %v624_v54  ;;  %v610_v58 = vsub.f32 %v3350_v52, %v572_v56  ;;  %v609_v59 = vsub.f32 %v3341_v45, %v569_v57 }
 0x12d   : > { %2950 = vpow2.f32 %v626_v55 }
 0x12e   : > { %v630_v62 = vmul.f32 1.442695, %v610_v58  ;;  %v628_v36 = vmul.f32 1.442695, %v609_v59 }
 0x12f   : > { %v578_v63 = vpop.xlane.xlu1 %577  ;;  %v575_v0 = vpop.xlane.xlu0 %574 }
 0x130   : > { %2952 = vpow2.f32 %v630_v62  ;;  %v612_v1 = vsub.f32 %v3362_v60, %v578_v63  ;;  %v611_v44 = vsub.f32 %v3353_v53, %v575_v0 }
 0x131   : > { %2954 = vpow2.f32 %v628_v36 }
 0x132   : > { %v3426_v37 = vpop.eup %2946  ;;  %v634_v2 = vmul.f32 1.442695, %v612_v1  ;;  %v632_v8 = vmul.f32 1.442695, %v611_v44 }
 0x133   : > { %v584_v11 = vpop.xlane.xlu1 %583  ;;  %v581_v12 = vpop.xlane.xlu0 %580  ;;  %v654_v45 = vsel %vm557_vm0, %v3426_v37, 0.0 }
 0x134   : > { %2956 = vpow2.f32 %v634_v2  ;;  %v614_v52 = vsub.f32 %v3374_v9, %v584_v11  ;;  %v613_v15 = vsub.f32 %v3365_v61, %v581_v12  ;;  %655 = vadd.xlane.f32.xlu1 %v654_v45  ;;  %v751_v11 = vld [vmem:[%s4117_s3 + $0x8] sm:$0xff] }
 0x135   : > { %2958 = vpow2.f32 %v632_v8  ;;  %v750_v8 = vld [vmem:[%s4117_s3] sm:$0xff] }
 0x136   : > { %v3432_v60 = vpop.eup %2948  ;;  %v638_v53 = vmul.f32 1.442695, %v614_v52  ;;  %v636_v16 = vmul.f32 1.442695, %v613_v15  ;;  %v2755_v52 = vpack.c.bf16 %v751_v11, %v750_v8  ;;  %v736_v8 = vld [vmem:[%s4116_s2 + $0x10] sm:$0xff]  ;;  %v737_v11 = vld [vmem:[%s4116_s2 + $0x18] sm:$0xff] }
 0x137   : > { %v3434_v19 = vpop.eup %2950  ;;  %v590_v20 = vpop.xlane.xlu1 %589  ;;  %v657_v24 = vsel %vm557_vm0, %v3432_v60, 0.0 }
 0x138   : > { %v587_v23 = vpop.xlane.xlu0 %586  ;;  %2960 = vpow2.f32 %v638_v53  ;;  %v616_v25 = vsub.f32 %v3386_v21, %v590_v20  ;;  %658 = vadd.xlane.f32.xlu0 %v657_v24  ;;  %v660_v61 = vsel %vm557_vm0, %v3434_v19, 0.0  ;;  %2756 = vmatprep.subr.bf16.mxu0 %v2755_v52  ;;  %v735_v20 = vld [vmem:[%s4116_s2 + $0x8] sm:$0xff] }
 0x139   : > { %v615_v9 = vsub.f32 %v3377_v10, %v587_v23  ;;  %2962 = vpow2.f32 %v636_v16  ;;  %661 = vadd.xlane.f32.xlu1 %v660_v61  ;;  %v734_v16 = vld [vmem:[%s4116_s2] sm:$0xff]  ;;  %2758 = vmatpush3.bf16.msra.mxu0 %v2755_v52  ;;  %v1115_v61 = vld [vmem:[%s4120_s6 + $0x10] sm:$0xff] }
 0x13a   : > { %v3442_v26 = vpop.eup %2952  ;;  %v642_v27 = vmul.f32 1.442695, %v616_v25  ;;  %v3511_v24 = vpack.c.bf16 %v735_v20, %v734_v16  ;;  %v1113_v25 = vld [vmem:[%s4120_s6] sm:$0xff]  ;;  %v2763_v16 = vpack.c.bf16 %v737_v11, %v736_v8  ;;  %v748_v11 = vld [vmem:[%s4116_s2 + $0x70] sm:$0xff] }
 0x13b   : > { %v640_v28 = vmul.f32 1.442695, %v615_v9  ;;  %v3444_v32 = vpop.eup %2954  ;;  %v596_v34 = vpop.xlane.xlu1 %595  ;;  %v666_v38 = vsel %vm557_vm0, %v3442_v26, 0.0  ;;  %v1114_v9 = vld [vmem:[%s4120_s6 + $0x8] sm:$0xff] }
 0x13c   : > { %v593_v35 = vpop.xlane.xlu0 %592  ;;  %2964 = vpow2.f32 %v642_v27  ;;  %v618_v10 = vsub.f32 %v3398_v29, %v596_v34  ;;  %v663_v39 = vsel %vm557_vm0, %v3444_v32, 0.0  ;;  %2760 = vmatprep.subr.bf16.mxu0 %v3511_v24  ;;  %v2791_v27 = vpack.c.bf16 %v1114_v9, %v1113_v25  ;;  %v738_v25 = vld [vmem:[%s4116_s2 + $0x20] sm:$0xff]  ;;  %v739_v9 = vld [vmem:[%s4116_s2 + $0x28] sm:$0xff] }
 0x13d   : > { %v617_v21 = vsub.f32 %v3389_v22, %v593_v35  ;;  %2966 = vpow2.f32 %v640_v28  ;;  %667 = vadd.xlane.f32.xlu1 %v666_v38  ;;  %664 = vadd.xlane.f32.xlu0 %v663_v39  ;;  %v1116_v28 = vld [vmem:[%s4120_s6 + $0x18] sm:$0xff]  ;;  %v1117_v35 = vld [vmem:[%s4120_s6 + $0x20] sm:$0xff]  ;;  %v1118_v38 = vld [vmem:[%s4120_s6 + $0x28] sm:$0xff] }
 0x13e   : > { %v3452_v40 = vpop.eup %2956  ;;  %v646_v43 = vmul.f32 1.442695, %v618_v10  ;;  %v2795_v34 = vpack.c.bf16 %v1116_v28, %v1115_v61  ;;  %2792 = vmatprep.subr.bf16.mxu1 %v2791_v27  ;;  %v2799_v10 = vpack.c.bf16 %v1118_v38, %v1117_v35  ;;  %v1120_v39 = vld [vmem:[%s4120_s6 + $0x38] sm:$0xff]  ;;  %v2767_v61 = vpack.c.bf16 %v739_v9, %v738_v25  ;;  %v740_v35 = vld [vmem:[%s4116_s2 + $0x30] sm:$0xff]  ;;  %v389_v9 = vld [vmem:[%s3637_s25 + $0x20] sm:$0xff] }
 0x13f   : > { %v644_v46 = vmul.f32 1.442695, %v617_v21  ;;  %v3454_v30 = vpop.eup %2958  ;;  %v602_v47 = vpop.xlane.xlu1 %601  ;;  %v672_v49 = vsel %vm557_vm0, %v3452_v40, 0.0  ;;  %2794 = vmatpush3.bf16.msra.mxu1 %v2791_v27  ;;  %v1119_v21 = vld [vmem:[%s4120_s6 + $0x30] sm:$0xff]  ;;  %v741_v38 = vld [vmem:[%s4116_s2 + $0x38] sm:$0xff] }
 0x140   : > { %v599_v48 = vpop.xlane.xlu0 %598  ;;  %2968 = vpow2.f32 %v646_v43  ;;  %v620_v22 = vsub.f32 %v3410_v41, %v602_v47  ;;  %v669_v50 = vsel %vm557_vm0, %v3454_v30, 0.0  ;;  %2796 = vmatprep.subr.bf16.mxu1 %v2795_v34  ;;  %v2803_v43 = vpack.c.bf16 %v1120_v39, %v1119_v21  ;;  %v1122_v47 = vld [vmem:[%s4120_s6 + $0x48] sm:$0xff]  ;;  %v388_v25 = vld [vmem:[%s3637_s25 + $0x18] sm:$0xff] }
 0x141   : > { %v619_v29 = vsub.f32 %v3401_v31, %v599_v48  ;;  %2970 = vpow2.f32 %v644_v46  ;;  %673 = vadd.xlane.f32.xlu1 %v672_v49  ;;  %670 = vadd.xlane.f32.xlu0 %v669_v50  ;;  %v1121_v46 = vld [vmem:[%s4120_s6 + $0x40] sm:$0xff]  ;;  %v1123_v49 = vld [vmem:[%s4120_s6 + $0x50] sm:$0xff]  ;;  %v2771_v21 = vpack.c.bf16 %v741_v38, %v740_v35  ;;  %v398_v38 = vld [vmem:[%s3637_s25 + $0x68] sm:$0xff] }
 0x142   : > { %v3462_v51 = vpop.eup %2960  ;;  %v650_v33 = vmul.f32 1.442695, %v620_v22  ;;  %v2807_v48 = vpack.c.bf16 %v1122_v47, %v1121_v46  ;;  %v1124_v22 = vld [vmem:[%s4120_s6 + $0x58] sm:$0xff]  ;;  %v1125_v50 = vld [vmem:[%s4120_s6 + $0x60] sm:$0xff] }
 0x143   : > { %v648_v54 = vmul.f32 1.442695, %v619_v29  ;;  %v3464_v55 = vpop.eup %2962  ;;  %v678_v57 = vsel %vm557_vm0, %v3462_v51, 0.0  ;;  %2798 = vmatpush3.bf16.msra.mxu1 %v2795_v34  ;;  %v2811_v29 = vpack.c.bf16 %v1124_v22, %v1123_v49  ;;  %v742_v47 = vld [vmem:[%s4116_s2 + $0x40] sm:$0xff] }
 0x144   : > { %v605_v56 = vpop.xlane.xlu0 %604  ;;  %2972 = vpow2.f32 %v650_v33  ;;  %v675_v31 = vsel %vm557_vm0, %v3464_v55, 0.0  ;;  %2800 = vmatprep.subr.bf16.mxu1 %v2799_v10  ;;  %v1126_v33 = vld [vmem:[%s4120_s6 + $0x68] sm:$0xff]  ;;  %v397_v35 = vld [vmem:[%s3637_s25 + $0x60] sm:$0xff] }
 0x145   : > { %v621_v41 = vsub.f32 %v3413_v42, %v605_v56  ;;  %2974 = vpow2.f32 %v648_v54  ;;  %679 = vadd.xlane.f32.xlu1 %v678_v57  ;;  %676 = vadd.xlane.f32.xlu0 %v675_v31  ;;  %v2815_v54 = vpack.c.bf16 %v1126_v33, %v1125_v50 }
 0x146   : > { %v3471_v58 = vpop.eup %2964 }
 0x147   : > { %v652_v59 = vmul.f32 1.442695, %v621_v41  ;;  %v3473_v62 = vpop.eup %2966  ;;  %v684_v36 = vsel %vm557_vm0, %v3471_v58, 0.0  ;;  %2802 = vmatpush3.bf16.msra.mxu1 %v2799_v10 }
 0x148   : > { %v681_v63 = vsel %vm557_vm0, %v3473_v62, 0.0  ;;  %2804 = vmatprep.subr.bf16.mxu1 %v2803_v43 }
 0x149   : > { %2976 = vpow2.f32 %v652_v59  ;;  %685 = vadd.xlane.f32.xlu1 %v684_v36  ;;  %682 = vadd.xlane.f32.xlu0 %v681_v63 }
 0x14a   : > { %v3479_v42 = vpop.eup %2968 }
 0x14b   : > { %v3481_v0 = vpop.eup %2970  ;;  %v690_v1 = vsel %vm557_vm0, %v3479_v42, 0.0  ;;  %2806 = vmatpush3.bf16.msra.mxu1 %v2803_v43 }
 0x14c   : > { %v687_v44 = vsel %vm557_vm0, %v3481_v0, 0.0  ;;  %2808 = vmatprep.subr.bf16.mxu1 %v2807_v48 }
 0x14d   : > { %691 = vadd.xlane.f32.xlu1 %v690_v1  ;;  %688 = vadd.xlane.f32.xlu0 %v687_v44 }
 0x14e   : > { %v3487_v2 = vpop.eup %2972 }
 0x14f   : > { %v3495_v12 = vpop.eup %2974  ;;  %v696_v45 = vsel %vm557_vm0, %v3487_v2, 0.0  ;;  %2810 = vmatpush3.bf16.msra.mxu1 %v2807_v48 }
 0x150   : > { %v693_v15 = vsel %vm557_vm0, %v3495_v12, 0.0  ;;  %2812 = vmatprep.subr.bf16.mxu1 %v2811_v29 }
 0x151   : > { %697 = vadd.xlane.f32.xlu1 %v696_v45  ;;  %694 = vadd.xlane.f32.xlu0 %v693_v15 }
 0x153   : > { %v3501_v53 = vpop.eup %2976  ;;  %2814 = vmatpush3.bf16.msra.mxu1 %v2811_v29 }
 0x154   : > { %v699_v23 = vsel %vm557_vm0, %v3501_v53, 0.0  ;;  %2816 = vmatprep.subr.bf16.mxu1 %v2815_v54 }
 0x155   : > { %700 = vadd.xlane.f32.xlu0 %v699_v23 }
 0x157   : > { %2818 = vmatpush3.bf16.msra.mxu1 %v2815_v54  ;;  %v744_v54 = vld [vmem:[%s4116_s2 + $0x50] sm:$0xff] }
 0x1c1   : > { %v656_v56 = vpop.xlane.xlu1 %655 }
 0x1c2   : > { %2978 = vrcp.f32 %v656_v56 }
 0x1c5   : > { %v659_v57 = vpop.xlane.xlu0 %658 }
 0x1c6   : > { %v662_v41 = vpop.xlane.xlu1 %661  ;;  %2980 = vrcp.f32 %v659_v57 }
 0x1c7   : > { %2982 = vrcp.f32 %v662_v41 }
 0x1ca   : > { %v668_v31 = vpop.xlane.xlu1 %667  ;;  %v665_v59 = vpop.xlane.xlu0 %664 }
 0x1cb   : > { %2984 = vrcp.f32 %v668_v31 }
 0x1cc   : > { %v2979_v36 = vpop.eup %2978  ;;  %2986 = vrcp.f32 %v665_v59 }
 0x1cd   : > { %v718_v63 = vmul.f32 %v2979_v36, %v3426_v37  ;;  %v747_v36 = vld [vmem:[%s4116_s2 + $0x68] sm:$0xff] }
 0x1ce   : > { %v674_v1 = vpop.xlane.xlu1 %673  ;;  %v671_v44 = vpop.xlane.xlu0 %670 }
 0x1cf   : > { %2988 = vrcp.f32 %v674_v1  ;;  %2619 = vmatprep.mubr.msk.f32.mxu0 %vm557_vm0, %v718_v63 }
 0x1d0   : > { %v2981_v45 = vpop.eup %2980  ;;  %2990 = vrcp.f32 %v671_v44 }
 0x1d1   : > { %v2983_v52 = vpop.eup %2982  ;;  %v719_v15 = vmul.f32 %v2981_v45, %v3432_v60 }
 0x1d2   : > { %v680_v37 = vpop.xlane.xlu1 %679  ;;  %v677_v20 = vpop.xlane.xlu0 %676  ;;  %v720_v23 = vmul.f32 %v2983_v52, %v3434_v19 }
 0x1d3   : > { %2992 = vrcp.f32 %v680_v37  ;;  %2620 = vmatmul.mubr.msk.f32.vlgmr.msra.gmra.mrb[0].mxu0 %vm557_vm0, %v719_v15 }
 0x1d4   : > { %2994 = vrcp.f32 %v677_v20  ;;  %2762 = vmatpush3.bf16.msra.mxu0 %v3511_v24  ;;  %2622 = vmatprep.mubr.msk.f32.mxu0 %vm557_vm0, %v720_v23  ;;  %v386_v20 = vld [vmem:[%s3637_s25 + $0x8] sm:$0xff]  ;;  %v387_v23 = vld [vmem:[%s3637_s25 + $0x10] sm:$0xff] }
 0x1d5   : > { %v2985_v60 = vpop.eup %2984  ;;  %2764 = vmatprep.subr.bf16.mxu0 %v2763_v16 }
 0x1d6   : > { %v2987_v19 = vpop.eup %2986  ;;  %v686_v27 = vpop.xlane.xlu1 %685  ;;  %v722_v34 = vmul.f32 %v2985_v60, %v3442_v26  ;;  %v391_v60 = vld [vmem:[%s3637_s25 + $0x30] sm:$0xff] }
 0x1d7   : > { %v683_v28 = vpop.xlane.xlu0 %682  ;;  %2996 = vrcp.f32 %v686_v27  ;;  %v721_v24 = vmul.f32 %v2987_v19, %v3444_v32  ;;  %v743_v32 = vld [vmem:[%s4116_s2 + $0x48] sm:$0xff]  ;;  %v393_v19 = vld [vmem:[%s3637_s25 + $0x40] sm:$0xff] }
 0x1d8   : > { %2998 = vrcp.f32 %v683_v28  ;;  %2766 = vmatpush3.bf16.msra.mxu0 %v2763_v16  ;;  %v2775_v22 = vpack.c.bf16 %v743_v32, %v742_v47  ;;  %v394_v27 = vld [vmem:[%s3637_s25 + $0x48] sm:$0xff]  ;;  %v395_v28 = vld [vmem:[%s3637_s25 + $0x50] sm:$0xff] }
 0x1d9   : > { %v2989_v10 = vpop.eup %2988  ;;  %2623 = vmatmul.mubr.msk.f32.gmra.mrb[2].mxu0 %vm557_vm0, %v721_v24  ;;  %2768 = vmatprep.subr.bf16.mxu0 %v2767_v61  ;;  %v399_v24 = vld [vmem:[%s3637_s25 + $0x70] sm:$0xff] }
 0x1da   : > { %v2991_v39 = vpop.eup %2990  ;;  %2625 = vmatprep.mubr.msk.f32.mxu0 %vm557_vm0, %v722_v34  ;;  %v692_v26 = vpop.xlane.xlu1 %691  ;;  %v724_v46 = vmul.f32 %v2989_v10, %v3452_v40  ;;  %v396_v34 = vld [vmem:[%s3637_s25 + $0x58] sm:$0xff] }
 0x1db   : > { %v689_v43 = vpop.xlane.xlu0 %688  ;;  %3000 = vrcp.f32 %v692_v26  ;;  %v723_v48 = vmul.f32 %v2991_v39, %v3454_v30  ;;  %v745_v30 = vld [vmem:[%s4116_s2 + $0x58] sm:$0xff] }
 0x1dc   : > { %3002 = vrcp.f32 %v689_v43  ;;  %2770 = vmatpush3.bf16.msra.mxu0 %v2767_v61  ;;  %v392_v61 = vld [vmem:[%s3637_s25 + $0x38] sm:$0xff]  ;;  %v2504_v43 = vld [vmem:[%s4119_s5] ss:$0 sm:$0xff] }
 0x1dd   : > { %v2993_v49 = vpop.eup %2992  ;;  %2626 = vmatmul.mubr.msk.f32.gmra.mrb[4].mxu0 %vm557_vm0, %v723_v48  ;;  %2772 = vmatprep.subr.bf16.mxu0 %v2771_v21  ;;  %v400_v10 = vld [vmem:[%s3637_s25 + $0x78] sm:$0xff] }
 0x1de   : > { %v2995_v40 = vpop.eup %2994  ;;  %2628 = vmatprep.mubr.msk.f32.mxu0 %vm557_vm0, %v724_v46  ;;  %v698_v29 = vpop.xlane.xlu1 %697  ;;  %v726_v33 = vmul.f32 %v2993_v49, %v3462_v51  ;;  %v2779_v51 = vpack.c.bf16 %v745_v30, %v744_v54  ;;  %v1128_v39 = vld [vmem:[%s4120_s6 + $0x78] sm:$0xff] }
 0x1df   : > { %v695_v50 = vpop.xlane.xlu0 %694  ;;  %3004 = vrcp.f32 %v698_v29  ;;  %v725_v56 = vmul.f32 %v2995_v40, %v3464_v55  ;;  %v746_v55 = vld [vmem:[%s4116_s2 + $0x60] sm:$0xff] }
 0x1e0   : > { %3006 = vrcp.f32 %v695_v50  ;;  %2774 = vmatpush3.bf16.msra.mxu0 %v2771_v21  ;;  %v2783_v44 = vpack.c.bf16 %v747_v36, %v746_v55  ;;  %v1127_v21 = vld [vmem:[%s4120_s6 + $0x70] sm:$0xff] }
 0x1e1   : > { %v2997_v57 = vpop.eup %2996  ;;  %2629 = vmatmul.mubr.msk.f32.gmra.mrb[6].mxu0 %vm557_vm0, %v725_v56  ;;  %2776 = vmatprep.subr.bf16.mxu0 %v2775_v22  ;;  %v2819_v26 = vpack.c.bf16 %v1128_v39, %v1127_v21 }
 0x1e2   : > { %v2999_v41 = vpop.eup %2998  ;;  %2631 = vmatprep.mubr.msk.f32.mxu0 %vm557_vm0, %v726_v33  ;;  %v728_v59 = vmul.f32 %v2997_v57, %v3471_v58 }
 0x1e3   : > { %v701_v31 = vpop.xlane.xlu0 %700  ;;  %v727_v63 = vmul.f32 %v2999_v41, %v3473_v62  ;;  %v749_v62 = vld [vmem:[%s4116_s2 + $0x78] sm:$0xff]  ;;  %2820 = vmatprep.subr.bf16.mxu1 %v2819_v26 }
 0x1e4   : > { %3008 = vrcp.f32 %v701_v31  ;;  %2778 = vmatpush3.bf16.msra.mxu0 %v2775_v22  ;;  %v2787_v15 = vpack.c.bf16 %v749_v62, %v748_v11  ;;  %2822 = vmatpush3.bf16.msra.mxu1 %v2819_v26 }
 0x1e5   : > { %v3001_v1 = vpop.eup %3000  ;;  %2632 = vmatmul.mubr.msk.f32.gmra.mrb[8].mxu0 %vm557_vm0, %v727_v63  ;;  %2780 = vmatprep.subr.bf16.mxu0 %v2779_v51 }
 0x1e6   : > { %v3003_v58 = vpop.eup %3002  ;;  %2634 = vmatprep.mubr.msk.f32.mxu0 %vm557_vm0, %v728_v59  ;;  %v730_v8 = vmul.f32 %v3001_v1, %v3479_v42 }
 0x1e7   : > { %v729_v45 = vmul.f32 %v3003_v58, %v3481_v0 }
 0x1e8   : > { %2782 = vmatpush3.bf16.msra.mxu0 %v2779_v51 }
 0x1e9   : > { %v3005_v52 = vpop.eup %3004  ;;  %2635 = vmatmul.mubr.msk.f32.gmra.mrb[10].mxu0 %vm557_vm0, %v729_v45  ;;  %2784 = vmatprep.subr.bf16.mxu0 %v2783_v44 }
 0x1ea   : > { %v3007_v16 = vpop.eup %3006  ;;  %2637 = vmatprep.mubr.msk.f32.mxu0 %vm557_vm0, %v730_v8  ;;  %v732_v42 = vmul.f32 %v3005_v52, %v3487_v2 }
 0x1eb   : > { %v731_v37 = vmul.f32 %v3007_v16, %v3495_v12  ;;  %v385_v12 = vld [vmem:[%s3637_s25] sm:$0xff] }
 0x1ec   : > { %2786 = vmatpush3.bf16.msra.mxu0 %v2783_v44 }
 0x1ed   : > { %2638 = vmatmul.mubr.msk.f32.gmra.mrb[12].mxu0 %vm557_vm0, %v731_v37  ;;  %2788 = vmatprep.subr.bf16.mxu0 %v2787_v15  ;;  %v3174_v37 = vmov 0  }
 0x1ee   : > { %v3009_v0 = vpop.eup %3008  ;;  %2640 = vmatprep.mubr.msk.f32.mxu0 %vm557_vm0, %v732_v42  ;;  %2944 = vset.pattern.permute.xlu0 %v3174_v37 }
 0x1ef   : > { %v733_v2 = vmul.f32 %v3009_v0, %v3501_v53  ;;  %v390_v53 = vld [vmem:[%s3637_s25 + $0x28] sm:$0xff]  ;;  %2945 = vset.pattern.permute.xlu1 %v3174_v37  ;;  %s4022_s25 = scalar_lea.sflag [#allocation3], %s338_s20 }
 0x1f0   : > { %2790 = vmatpush3.bf16.msra.mxu0 %v2787_v15 }
 0x1f1   : > { %2641 = vmatmul.mubr.msk.f32.gmra.mrb[14].mxu0 %vm557_vm0, %v733_v2 }
 0x1f2   : > { %2675 = vmatprep.mubr.f32.mxu0 %v385_v12 }
 0x1f5   : > { %2676 = vmatmul.mubr.f32.vlgmr.msra.gmra.mrb[0].mxu0 %v386_v20 }
 0x1f6   : > { %2678 = vmatprep.mubr.f32.mxu0 %v387_v23 }
 0x1f9   : > { %2679 = vmatmul.mubr.f32.gmra.mrb[2].mxu0 %v388_v25 }
 0x1fa   : > { %2681 = vmatprep.mubr.f32.mxu0 %v389_v9 }
 0x1fd   : > { %2682 = vmatmul.mubr.f32.gmra.mrb[4].mxu0 %v390_v53 }
 0x1fe   : > { %2684 = vmatprep.mubr.f32.mxu0 %v391_v60 }
 0x201   : > { %2685 = vmatmul.mubr.f32.gmra.mrb[6].mxu0 %v392_v61 }
 0x202   : > { %2687 = vmatprep.mubr.f32.mxu0 %v393_v19 }
 0x205   : > { %2688 = vmatmul.mubr.f32.gmra.mrb[8].mxu0 %v394_v27 }
 0x206   : > { %2690 = vmatprep.mubr.f32.mxu0 %v395_v28 }
 0x209   : > { %2691 = vmatmul.mubr.f32.gmra.mrb[10].mxu0 %v396_v34 }
 0x20a   : > { %2693 = vmatprep.mubr.f32.mxu0 %v397_v35 }
 0x20d   : > { %2694 = vmatmul.mubr.f32.gmra.mrb[12].mxu0 %v398_v38 }
 0x20e   : > { %2696 = vmatprep.mubr.f32.mxu0 %v399_v24 }
 0x211   : > { %2697 = vmatmul.mubr.f32.gmra.mrb[14].mxu0 %v400_v10 }
 0x2c8   : > { %v2677_v46 = vpop.f32.mrb[0].mxu0 }
 0x2c9   : > { %v1011_v47 = vpop.f32.mrb[1].mxu0  ;;  %v3670_v48 = vadd.f32 %v2677_v46, %v2504_v43 }
 0x2ca   : > { %v3668_v32 = vadd.f32 %v2504_v43, %v1011_v47 }
 0x2cc   : > { %v2680_v49 = vpop.f32.mrb[2].mxu0  ;;  %2731 = vmatprep.mubr.f32.mxu1 %v3668_v32 }
 0x2cd   : > { %v1021_v22 = vpop.f32.mrb[3].mxu0  ;;  %2732 = vmatmul.mubr.f32.vlgmr.msra.gmra.mrb[0].mxu1 %v3670_v48  ;;  %v3676_v29 = vadd.f32 %v2680_v49, %v2504_v43 }
 0x2ce   : > { %v3674_v40 = vadd.f32 %v2504_v43, %v1021_v22 }
 0x2d0   : > { %v2683_v50 = vpop.f32.mrb[4].mxu0  ;;  %2734 = vmatprep.mubr.f32.mxu1 %v3674_v40 }
 0x2d1   : > { %v1031_v33 = vpop.f32.mrb[5].mxu0  ;;  %2735 = vmatmul.mubr.f32.gmra.mrb[2].mxu1 %v3676_v29  ;;  %v3682_v30 = vadd.f32 %v2683_v50, %v2504_v43 }
 0x2d2   : > { %v3680_v54 = vadd.f32 %v2504_v43, %v1031_v33 }
 0x2d4   : > { %v2686_v56 = vpop.f32.mrb[6].mxu0  ;;  %2737 = vmatprep.mubr.f32.mxu1 %v3680_v54 }
 0x2d5   : > { %v1041_v57 = vpop.f32.mrb[7].mxu0  ;;  %2738 = vmatmul.mubr.f32.gmra.mrb[4].mxu1 %v3682_v30  ;;  %v3688_v41 = vadd.f32 %v2686_v56, %v2504_v43 }
 0x2d6   : > { %v3686_v51 = vadd.f32 %v2504_v43, %v1041_v57 }
 0x2d8   : > { %v2689_v31 = vpop.f32.mrb[8].mxu0  ;;  %2740 = vmatprep.mubr.f32.mxu1 %v3686_v51 }
 0x2d9   : > { %v1051_v59 = vpop.f32.mrb[9].mxu0  ;;  %2741 = vmatmul.mubr.f32.gmra.mrb[6].mxu1 %v3688_v41  ;;  %v3694_v36 = vadd.f32 %v2689_v31, %v2504_v43 }
 0x2da   : > { %v3692_v55 = vadd.f32 %v2504_v43, %v1051_v59 }
 0x2dc   : > { %v2692_v63 = vpop.f32.mrb[10].mxu0  ;;  %2743 = vmatprep.mubr.f32.mxu1 %v3692_v55 }
 0x2dd   : > { %v1061_v1 = vpop.f32.mrb[11].mxu0  ;;  %2744 = vmatmul.mubr.f32.gmra.mrb[8].mxu1 %v3694_v36  ;;  %v3700_v58 = vadd.f32 %v2692_v63, %v2504_v43 }
 0x2de   : > { %v3698_v44 = vadd.f32 %v2504_v43, %v1061_v1 }
 0x2e0   : > { %v2695_v8 = vpop.f32.mrb[12].mxu0  ;;  %2746 = vmatprep.mubr.f32.mxu1 %v3698_v44 }
 0x2e1   : > { %v1071_v11 = vpop.f32.mrb[13].mxu0  ;;  %2747 = vmatmul.mubr.f32.gmra.mrb[10].mxu1 %v3700_v58  ;;  %v3706_v45 = vadd.f32 %v2695_v8, %v2504_v43 }
 0x2e2   : > { %v3704_v62 = vadd.f32 %v2504_v43, %v1071_v11 }
 0x2e4   : > { %v2698_v52 = vpop.f32.mrb[14].mxu0  ;;  %2749 = vmatprep.mubr.f32.mxu1 %v3704_v62 }
 0x2e5   : > { %v1081_v15 = vpop.f32.mrb[15].mxu0  ;;  %2750 = vmatmul.mubr.f32.gmra.mrb[12].mxu1 %v3706_v45  ;;  %v3712_v42 = vadd.f32 %v2698_v52, %v2504_v43 }
 0x2e6   : > { %v3710_v16 = vadd.f32 %v2504_v43, %v1081_v15 }
 0x2e8   : > { %2752 = vmatprep.mubr.f32.mxu1 %v3710_v16 }
 0x2e9   : > { %2753 = vmatmul.mubr.f32.gmra.mrb[14].mxu1 %v3712_v42 }
 0x3a0   : > { %v2733_v0 = vpop.f32.mrb[0].mxu1 }
 0x3a1   : > { %vm1275_vm1 = vcmp.gt.f32.partialorder %v2733_v0, 0.0  ;;  %v1291_v2 = vmul.f32 0.01, %v2733_v0  ;;  %v1195_v12 = vpop.f32.mrb[1].mxu1 }
 0x3a2   : > { %vm1274_vm2 = vcmp.gt.f32.partialorder %v1195_v12, 0.0  ;;  %v1290_v20 = vmul.f32 0.01, %v1195_v12 }
 0x3a3   : > { %v3716_v23 = vsel %vm1275_vm1, %v2733_v0, %v1291_v2  ;;  %vm1452_vm1 = vcmask 1041409  }
 0x3a4   : > { %1342 = vperm.xlu0 %2944, %v3716_v23   ;;  %v2736_v25 = vpop.f32.mrb[2].mxu1  ;;  %v3719_v9 = vsel %vm1274_vm2, %v1195_v12, %v1290_v20  ;;  %vm1454_vm2 = vcmask 1042434  }
 0x3a5   : > { %vm1277_vm3 = vcmp.gt.f32.partialorder %v2736_v25, 0.0  ;;  %v1293_v53 = vmul.f32 0.01, %v2736_v25  ;;  %1339 = vperm.xlu1 %2945, %v3719_v9   ;;  %v1205_v60 = vpop.f32.mrb[3].mxu1 }
 0x3a6   : > { %v1292_v19 = vmul.f32 0.01, %v1205_v60  ;;  %vm1276_vm4 = vcmp.gt.f32.partialorder %v1205_v60, 0.0 }
 0x3a7   : > { %v3722_v61 = vsel %vm1277_vm3, %v2736_v25, %v1293_v53  ;;  %vm1456_vm3 = vcmask 1043459  }
 0x3a8   : > { %v2739_v27 = vpop.f32.mrb[4].mxu1  ;;  %v3728_v10 = vsel %vm1276_vm4, %v1205_v60, %v1292_v19  ;;  %vm1458_vm4 = vcmask 1044484  }
 0x3a9   : > { %vm1279_vm5 = vcmp.gt.f32.partialorder %v2739_v27, 0.0  ;;  %v1295_v28 = vmul.f32 0.01, %v2739_v27  ;;  %1348 = vperm.xlu1 %2945, %v3722_v61   ;;  %v1215_v34 = vpop.f32.mrb[5].mxu1 }
 0x3aa   : > { %v1294_v38 = vmul.f32 0.01, %v1215_v34  ;;  %vm1278_vm6 = vcmp.gt.f32.partialorder %v1215_v34, 0.0 }
 0x3ab   : > { %v3725_v35 = vsel %vm1279_vm5, %v2739_v27, %v1295_v28  ;;  %vm1460_vm5 = vcmask 1045509  }
 0x3ac   : > { %1354 = vperm.xlu0 %2944, %v3725_v35   ;;  %v2742_v24 = vpop.f32.mrb[6].mxu1  ;;  %v3731_v46 = vsel %vm1278_vm6, %v1215_v34, %v1294_v38  ;;  %vm1462_vm6 = vcmask 1046534  }
 0x3ad   : > { %1345 = vperm.xlu1 %2945, %v3728_v10   ;;  %v1225_v21 = vpop.f32.mrb[7].mxu1  ;;  %v1297_v26 = vmul.f32 0.01, %v2742_v24  ;;  %vm1281_vm8 = vcmp.gt.f32.partialorder %v2742_v24, 0.0 }
 0x3ae   : > { %vm1280_vm7 = vcmp.gt.f32.partialorder %v1225_v21, 0.0  ;;  %v1296_v39 = vmul.f32 0.01, %v1225_v21 }
 0x3af   : > { %v3739_v57 = vsel %vm1281_vm8, %v2742_v24, %v1297_v26  ;;  %vm1475_vm8 = vcmask 64512  }
 0x3b0   : > { %v2745_v43 = vpop.f32.mrb[8].mxu1  ;;  %v3733_v47 = vsel %vm1280_vm7, %v1225_v21, %v1296_v39  ;;  %vm1464_vm7 = vcmask 1047559  }
 0x3b1   : > { %vm1283_vm9 = vcmp.gt.f32.partialorder %v2745_v43, 0.0  ;;  %v1299_v49 = vmul.f32 0.01, %v2745_v43  ;;  %1351 = vperm.xlu1 %2945, %v3731_v46   ;;  %1357 = vperm.xlu0 %2944, %v3733_v47   ;;  %v1235_v22 = vpop.f32.mrb[9].mxu1 }
 0x3b2   : > { %v1298_v33 = vmul.f32 0.01, %v1235_v22  ;;  %vm1282_vm10 = vcmp.gt.f32.partialorder %v1235_v22, 0.0 }
 0x3b3   : > { %v3737_v50 = vsel %vm1283_vm9, %v2745_v43, %v1299_v49 }
 0x3b4   : > { %v2748_v56 = vpop.f32.mrb[10].mxu1  ;;  %v3743_v1 = vsel %vm1282_vm10, %v1235_v22, %v1298_v33 }
 0x3b5   : > { %1360 = vperm.xlu0 %2944, %v3739_v57   ;;  %1366 = vperm.xlu1 %2945, %v3737_v50   ;;  %v1245_v31 = vpop.f32.mrb[11].mxu1  ;;  %v1301_v59 = vmul.f32 0.01, %v2748_v56  ;;  %vm1285_vm11 = vcmp.gt.f32.partialorder %v2748_v56, 0.0 }
 0x3b6   : > { %v1300_v11 = vmul.f32 0.01, %v1245_v31  ;;  %vm1284_vm12 = vcmp.gt.f32.partialorder %v1245_v31, 0.0 }
 0x3b7   : > { %v3746_v15 = vsel %vm1285_vm11, %v2748_v56, %v1301_v59 }
 0x3b8   : > { %v2751_v63 = vpop.f32.mrb[12].mxu1  ;;  %v3749_v2 = vsel %vm1284_vm12, %v1245_v31, %v1300_v11 }
 0x3b9   : > { %1363 = vperm.xlu1 %2945, %v3743_v1   ;;  %v1255_v8 = vpop.f32.mrb[13].mxu1  ;;  %v1303_v0 = vmul.f32 0.01, %v2751_v63  ;;  %vm1287_vm13 = vcmp.gt.f32.partialorder %v2751_v63, 0.0 }
 0x3ba   : > { %v1302_v12 = vmul.f32 0.01, %v1255_v8  ;;  %vm1286_vm14 = vcmp.gt.f32.partialorder %v1255_v8, 0.0 }
 0x3bb   : > { %v3752_v20 = vsel %vm1287_vm13, %v2751_v63, %v1303_v0 }
 0x3bc   : > { %v2754_v52 = vpop.f32.mrb[14].mxu1  ;;  %v3755_v53 = vsel %vm1286_vm14, %v1255_v8, %v1302_v12 }
 0x3bd   : > { %1372 = vperm.xlu1 %2945, %v3746_v15   ;;  %v1265_v37 = vpop.f32.mrb[15].mxu1  ;;  %v1305_v60 = vmul.f32 0.01, %v2754_v52  ;;  %vm1289_vm0 = vcmp.gt.f32.partialorder %v2754_v52, 0.0 }
 0x3be   : > { %v1304_v25 = vmul.f32 0.01, %v1265_v37  ;;  %vm1288_vm15 = vcmp.gt.f32.partialorder %v1265_v37, 0.0 }
 0x3bf   : > { %v3761_v27 = vsel %vm1289_vm0, %v2754_v52, %v1305_v60 }
 0x3c0   : > { %v3758_v19 = vsel %vm1288_vm15, %v1265_v37, %v1304_v25 }
 0x3c1   : > { %1369 = vperm.xlu1 %2945, %v3749_v2  }
 0x3c5   : > { %1378 = vperm.xlu1 %2945, %v3752_v20  }
 0x3c9   : > { %1375 = vperm.xlu1 %2945, %v3755_v53  }
 0x3cd   : > { %1381 = vperm.xlu1 %2945, %v3758_v19  }
 0x3d1   : > { %1384 = vperm.xlu1 %2945, %v3761_v27  }
 0x423   : > { %v1343_v34 = vpop.permute.xlu0 %1342 }
 0x424   : > { %v1340_v28 = vpop.permute.xlu1 %1339  ;;  %v1395_v24 = vrot.slane %v1343_v34, %v3278_v4 }
 0x425   : > { %v1391_v21 = vrot.slane %v1340_v28, %v3278_v4 }
 0x427   : > { %v1453_v49 = vsel %vm1452_vm1, %v1395_v24, %v1391_v21 }
 0x428   : > { %v1349_v38 = vpop.permute.xlu1 %1348 }
 0x429   : > { %v1403_v33 = vrot.slane %v1349_v38, %v3278_v4 }
 0x42b   : > { %v1355_v39 = vpop.permute.xlu0 %1354 }
 0x42c   : > { %v1346_v26 = vpop.permute.xlu1 %1345  ;;  %v1411_v63 = vrot.slane %v1355_v39, %v3278_v4 }
 0x42d   : > { %v1399_v43 = vrot.slane %v1346_v26, %v3278_v4 }
 0x42f   : > { %v1455_v22 = vsel %vm1454_vm2, %v1399_v43, %v1453_v49 }
 0x430   : > { %v1352_v56 = vpop.permute.xlu1 %1351  ;;  %v1358_v31 = vpop.permute.xlu0 %1357  ;;  %v1457_v8 = vsel %vm1456_vm3, %v1403_v33, %v1455_v22 }
 0x431   : > { %v1407_v59 = vrot.slane %v1352_v56, %v3278_v4  ;;  %v1415_v52 = vrot.slane %v1358_v31, %v3278_v4 }
 0x433   : > { %v1459_v11 = vsel %vm1458_vm4, %v1407_v59, %v1457_v8 }
 0x434   : > { %v1361_v37 = vpop.permute.xlu0 %1360  ;;  %v1367_v0 = vpop.permute.xlu1 %1366  ;;  %v1461_v12 = vsel %vm1460_vm5, %v1411_v63, %v1459_v11 }
 0x435   : > { %v1419_v25 = vrot.slane %v1361_v37, %v3278_v4  ;;  %v1463_v60 = vsel %vm1462_vm6, %v1415_v52, %v1461_v12  ;;  %v1427_v49 = vrot.slane %v1367_v0, %v3278_v4 }
 0x437   : > { %v1465_v28 = vsel %vm1464_vm7, %v1419_v25, %v1463_v60 }
 0x438   : > { %v1364_v34 = vpop.permute.xlu1 %1363  ;;  %v1476_v38 = vsel %vm1475_vm8, %v1465_v28, -inf }
 0x439   : > { %1477 = vmax.xlane.f32.xlu0 %v1476_v38  ;;  %v1423_v26 = vrot.slane %v1364_v34, %v3278_v4 }
 0x43b   : > { %v1466_v33 = vsel %vm1452_vm1, %v1427_v49, %v1423_v26 }
 0x43c   : > { %v1373_v24 = vpop.permute.xlu1 %1372 }
 0x43d   : > { %v1435_v59 = vrot.slane %v1373_v24, %v3278_v4 }
 0x440   : > { %v1370_v21 = vpop.permute.xlu1 %1369 }
 0x441   : > { %v1431_v43 = vrot.slane %v1370_v21, %v3278_v4 }
 0x443   : > { %v1467_v56 = vsel %vm1454_vm2, %v1431_v43, %v1466_v33 }
 0x444   : > { %v1379_v39 = vpop.permute.xlu1 %1378  ;;  %v1468_v8 = vsel %vm1456_vm3, %v1435_v59, %v1467_v56 }
 0x445   : > { %v1443_v37 = vrot.slane %v1379_v39, %v3278_v4 }
 0x448   : > { %v1376_v22 = vpop.permute.xlu1 %1375 }
 0x449   : > { %v1439_v31 = vrot.slane %v1376_v22, %v3278_v4 }
 0x44b   : > { %v1469_v11 = vsel %vm1458_vm4, %v1439_v31, %v1468_v8 }
 0x44c   : > { %v1382_v63 = vpop.permute.xlu1 %1381  ;;  %v1470_v25 = vsel %vm1460_vm5, %v1443_v37, %v1469_v11 }
 0x44d   : > { %v1447_v52 = vrot.slane %v1382_v63, %v3278_v4 }
 0x44f   : > { %v1471_v60 = vsel %vm1462_vm6, %v1447_v52, %v1470_v25 }
 0x450   : > { %v1385_v12 = vpop.permute.xlu1 %1384 }
 0x451   : > { %v1451_v0 = vrot.slane %v1385_v12, %v3278_v4 }
 0x453   : > { %v1472_v28 = vsel %vm1464_vm7, %v1451_v0, %v1471_v60 }
 0x454   : > { %v1479_v34 = vsel %vm1475_vm8, %v1472_v28, -inf }
 0x455   : > { %1480 = vmax.xlane.f32.xlu1 %v1479_v34 }
 0x4c6   : > { %v1478_v38 = vpop.xlane.xlu0 %1477 }
 0x4c7   : > { %v1487_v24 = vrot.slane %v1478_v38, %v3276_v3  ;;  %v1491_v21 = vrot.slane %v1478_v38, %v3285_v6  ;;  %v1495_v26 = vrot.slane %v1478_v38, %v3280_v5  ;;  %v1499_v39 = vrot.slane %v1478_v38, %v3287_v7 }
 0x4c8   : > { %v1503_v31 = vrot.slane %v1478_v38, %v3293_v13  ;;  %v1507_v8 = vrot.slane %v1478_v38, %v3295_v14 }
 0x4c9   : > { %v1564_v43 = vsub.f32 %v3719_v9, %v1487_v24  ;;  %v1565_v49 = vsub.f32 %v3716_v23, %v1491_v21  ;;  %v1566_v22 = vsub.f32 %v3728_v10, %v1495_v26  ;;  %v1567_v59 = vsub.f32 %v3722_v61, %v1499_v39 }
 0x4ca   : > { %v1568_v11 = vsub.f32 %v3731_v46, %v1503_v31  ;;  %v1569_v9 = vsub.f32 %v3725_v35, %v1507_v8  ;;  %v1511_v35 = vrot.slane %v1478_v38, %v3299_v17  ;;  %v1515_v24 = vrot.slane %v1478_v38, %v3301_v18 }
 0x4cb   : > { %v1580_v33 = vmul.f32 1.442695, %v1564_v43  ;;  %v1582_v56 = vmul.f32 1.442695, %v1565_v49  ;;  %v1584_v63 = vmul.f32 1.442695, %v1566_v22 }
 0x4cc   : > { %v1586_v52 = vmul.f32 1.442695, %v1567_v59  ;;  %v1588_v23 = vmul.f32 1.442695, %v1568_v11  ;;  %v1590_v61 = vmul.f32 1.442695, %v1569_v9  ;;  %v1570_v21 = vsub.f32 %v3733_v47, %v1511_v35 }
 0x4cd   : > { %3010 = vpow2.f32 %v1580_v33  ;;  %v1571_v31 = vsub.f32 %v3739_v57, %v1515_v24 }
 0x4ce   : > { %3012 = vpow2.f32 %v1582_v56  ;;  %v1592_v59 = vmul.f32 1.442695, %v1570_v21 }
 0x4cf   : > { %3014 = vpow2.f32 %v1584_v63  ;;  %v1594_v38 = vmul.f32 1.442695, %v1571_v31 }
 0x4d0   : > { %3016 = vpow2.f32 %v1586_v52 }
 0x4d1   : > { %3018 = vpow2.f32 %v1588_v23 }
 0x4d2   : > { %3020 = vpow2.f32 %v1590_v61 }
 0x4d7   : > { %v3808_v10 = vpop.eup %3010 }
 0x4d8   : > { %v3810_v37 = vpop.eup %3012  ;;  %1629 = vperm.xlu0 %2944, %v3808_v10  }
 0x4d9   : > { %1632 = vperm.xlu1 %2945, %v3810_v37   ;;  %v3814_v12 = vpop.eup %3014 }
 0x4da   : > { %v3817_v46 = vpop.eup %3016 }
 0x4db   : > { %v3821_v25 = vpop.eup %3018 }
 0x4dc   : > { %1635 = vperm.xlu0 %2944, %v3814_v12   ;;  %v3833_v22 = vpop.eup %3020 }
 0x4e0   : > { %1638 = vperm.xlu0 %2944, %v3817_v46  }
 0x4e2   : > { %v1481_v0 = vpop.xlane.xlu1 %1480 }
 0x4e3   : > { %v1519_v60 = vrot.slane %v1481_v0, %v3276_v3  ;;  %v1523_v28 = vrot.slane %v1481_v0, %v3285_v6  ;;  %v1527_v34 = vrot.slane %v1481_v0, %v3280_v5  ;;  %v1531_v43 = vrot.slane %v1481_v0, %v3287_v7 }
 0x4e4   : > { %1641 = vperm.xlu0 %2944, %v3821_v25   ;;  %v1535_v47 = vrot.slane %v1481_v0, %v3293_v13  ;;  %v1543_v11 = vrot.slane %v1481_v0, %v3299_v17  ;;  %v1547_v23 = vrot.slane %v1481_v0, %v3301_v18 }
 0x4e5   : > { %v1572_v26 = vsub.f32 %v3743_v1, %v1519_v60  ;;  %v1573_v39 = vsub.f32 %v3737_v50, %v1523_v28  ;;  %v1574_v49 = vsub.f32 %v3749_v2, %v1527_v34  ;;  %v1575_v1 = vsub.f32 %v3746_v15, %v1531_v43 }
 0x4e6   : > { %v1539_v2 = vrot.slane %v1481_v0, %v3295_v14  ;;  %v1576_v63 = vsub.f32 %v3755_v53, %v1535_v47  ;;  %v1578_v53 = vsub.f32 %v3758_v19, %v1543_v11 }
 0x4e7   : > { %v1596_v33 = vmul.f32 1.442695, %v1572_v26  ;;  %v1598_v56 = vmul.f32 1.442695, %v1573_v39  ;;  %v1600_v50 = vmul.f32 1.442695, %v1574_v49 }
 0x4e8   : > { %1644 = vperm.xlu0 %2944, %v3833_v22   ;;  %v1602_v8 = vmul.f32 1.442695, %v1575_v1  ;;  %v1577_v57 = vsub.f32 %v3752_v20, %v1539_v2  ;;  %v1604_v52 = vmul.f32 1.442695, %v1576_v63  ;;  %v1579_v20 = vsub.f32 %v3761_v27, %v1547_v23 }
 0x4e9   : > { %3022 = vpow2.f32 %v1596_v33  ;;  %v1608_v28 = vmul.f32 1.442695, %v1578_v53 }
 0x4ea   : > { %3024 = vpow2.f32 %v1598_v56  ;;  %v1606_v61 = vmul.f32 1.442695, %v1577_v57  ;;  %v1610_v19 = vmul.f32 1.442695, %v1579_v20 }
 0x4eb   : > { %3026 = vpow2.f32 %v1592_v59 }
 0x4ec   : > { %3028 = vpow2.f32 %v1600_v50 }
 0x4ed   : > { %3030 = vpow2.f32 %v1594_v38 }
 0x4ee   : > { %3032 = vpow2.f32 %v1602_v8 }
 0x4ef   : > { %3034 = vpow2.f32 %v1604_v52 }
 0x4f0   : > { %3036 = vpow2.f32 %v1606_v61 }
 0x4f1   : > { %3038 = vpow2.f32 %v1608_v28 }
 0x4f2   : > { %3040 = vpow2.f32 %v1610_v19 }
 0x4f3   : > { %v3843_v9 = vpop.eup %3022 }
 0x4f4   : > { %v3845_v15 = vpop.eup %3024  ;;  %1653 = vperm.xlu0 %2944, %v3843_v9  }
 0x4f5   : > { %1656 = vperm.xlu1 %2945, %v3845_v15   ;;  %v3851_v35 = vpop.eup %3026 }
 0x4f6   : > { %v3853_v60 = vpop.eup %3028 }
 0x4f7   : > { %v3858_v34 = vpop.eup %3030 }
 0x4f8   : > { %1647 = vperm.xlu0 %2944, %v3851_v35   ;;  %v3860_v24 = vpop.eup %3032 }
 0x4f9   : > { %1659 = vperm.xlu1 %2945, %v3853_v60   ;;  %v3864_v0 = vpop.eup %3034 }
 0x4fa   : > { %v3867_v21 = vpop.eup %3036 }
 0x4fb   : > { %v3870_v27 = vpop.eup %3038 }
 0x4fc   : > { %1650 = vperm.xlu0 %2944, %v3858_v34   ;;  %v3873_v26 = vpop.eup %3040 }
 0x4fd   : > { %1662 = vperm.xlu1 %2945, %v3860_v24  }
 0x501   : > { %1665 = vperm.xlu1 %2945, %v3864_v0  }
 0x505   : > { %1668 = vperm.xlu1 %2945, %v3867_v21  }
 0x509   : > { %1671 = vperm.xlu1 %2945, %v3870_v27  }
 0x50d   : > { %1674 = vperm.xlu1 %2945, %v3873_v26  }
 0x557   : > { %v1630_v39 = vpop.permute.xlu0 %1629 }
 0x558   : > { %v1633_v31 = vpop.permute.xlu1 %1632  ;;  %v1679_v47 = vrot.slane %v1630_v39, %v3278_v4 }
 0x559   : > { %v1683_v1 = vrot.slane %v1633_v31, %v3278_v4 }
 0x55b   : > { %v1636_v43 = vpop.permute.xlu0 %1635  ;;  %v1740_v11 = vsel %vm1452_vm1, %v1683_v1, %v1679_v47 }
 0x55c   : > { %v1687_v38 = vrot.slane %v1636_v43, %v3278_v4 }
 0x55e   : > { %v1741_v23 = vsel %vm1454_vm2, %v1687_v38, %v1740_v11 }
 0x55f   : > { %v1639_v49 = vpop.permute.xlu0 %1638 }
 0x560   : > { %v1691_v2 = vrot.slane %v1639_v49, %v3278_v4 }
 0x562   : > { %v1742_v61 = vsel %vm1456_vm3, %v1691_v2, %v1741_v23 }
 0x563   : > { %v1642_v33 = vpop.permute.xlu0 %1641 }
 0x564   : > { %v1695_v63 = vrot.slane %v1642_v33, %v3278_v4 }
 0x566   : > { %v1743_v20 = vsel %vm1458_vm4, %v1695_v63, %v1742_v61 }
 0x567   : > { %v1645_v56 = vpop.permute.xlu0 %1644 }
 0x568   : > { %v1699_v57 = vrot.slane %v1645_v56, %v3278_v4 }
 0x56a   : > { %v1744_v19 = vsel %vm1460_vm5, %v1699_v57, %v1743_v20 }
 0x573   : > { %v1654_v59 = vpop.permute.xlu0 %1653 }
 0x574   : > { %v1657_v50 = vpop.permute.xlu1 %1656  ;;  %v1711_v1 = vrot.slane %v1654_v59, %v3278_v4 }
 0x575   : > { %v1715_v38 = vrot.slane %v1657_v50, %v3278_v4 }
 0x577   : > { %v1648_v8 = vpop.permute.xlu0 %1647  ;;  %v1747_v57 = vsel %vm1452_vm1, %v1715_v38, %v1711_v1 }
 0x578   : > { %v1660_v52 = vpop.permute.xlu1 %1659  ;;  %v1703_v53 = vrot.slane %v1648_v8, %v3278_v4 }
 0x579   : > { %v1719_v2 = vrot.slane %v1660_v52, %v3278_v4 }
 0x57a   : > { %v1745_v49 = vsel %vm1462_vm6, %v1703_v53, %v1744_v19 }
 0x57b   : > { %v1651_v28 = vpop.permute.xlu0 %1650  ;;  %v1748_v53 = vsel %vm1454_vm2, %v1719_v2, %v1747_v57 }
 0x57c   : > { %v1707_v39 = vrot.slane %v1651_v28, %v3278_v4  ;;  %v1663_v43 = vpop.permute.xlu1 %1662 }
 0x57d   : > { %v1723_v63 = vrot.slane %v1663_v43, %v3278_v4 }
 0x57e   : > { %v1746_v33 = vsel %vm1464_vm7, %v1707_v39, %v1745_v49 }
 0x57f   : > { %v1756_v56 = vsel %vm1475_vm8, %v1746_v33, 0.0  ;;  %v1749_v20 = vsel %vm1456_vm3, %v1723_v63, %v1748_v53 }
 0x580   : > { %v1666_v31 = vpop.permute.xlu1 %1665  ;;  %1757 = vadd.xlane.f32.xlu0 %v1756_v56 }
 0x581   : > { %v1727_v8 = vrot.slane %v1666_v31, %v3278_v4 }
 0x583   : > { %v1750_v59 = vsel %vm1458_vm4, %v1727_v8, %v1749_v20 }
 0x584   : > { %v1669_v47 = vpop.permute.xlu1 %1668 }
 0x585   : > { %v1731_v23 = vrot.slane %v1669_v47, %v3278_v4 }
 0x587   : > { %v1751_v52 = vsel %vm1460_vm5, %v1731_v23, %v1750_v59 }
 0x588   : > { %v1672_v11 = vpop.permute.xlu1 %1671 }
 0x589   : > { %v1735_v61 = vrot.slane %v1672_v11, %v3278_v4 }
 0x58b   : > { %v1752_v19 = vsel %vm1462_vm6, %v1735_v61, %v1751_v52 }
 0x58c   : > { %v1675_v50 = vpop.permute.xlu1 %1674 }
 0x58d   : > { %v1739_v28 = vrot.slane %v1675_v50, %v3278_v4 }
 0x58f   : > { %v1753_v39 = vsel %vm1464_vm7, %v1739_v28, %v1752_v19 }
 0x590   : > { %v1759_v43 = vsel %vm1475_vm8, %v1753_v39, 0.0 }
 0x591   : > { %1760 = vadd.xlane.f32.xlu1 %v1759_v43 }
 0x60d   : > { %v1758_v49 = vpop.xlane.xlu0 %1757 }
 0x60e   : > { %3042 = vrcp.f32 %v1758_v49 }
 0x618   : > { %v3043_v33 = vpop.eup %3042 }
 0x619   : > { %v1769_v56 = vrot.slane %v3043_v33, %v3276_v3  ;;  %v1773_v31 = vrot.slane %v3043_v33, %v3285_v6  ;;  %v1777_v38 = vrot.slane %v3043_v33, %v3280_v5  ;;  %v1781_v8 = vrot.slane %v3043_v33, %v3287_v7 }
 0x61a   : > { %v1785_v57 = vrot.slane %v3043_v33, %v3293_v13 }
 0x61b   : > { %v1846_v47 = vmul.f32 %v3808_v10, %v1769_v56  ;;  %v1847_v1 = vmul.f32 %v3810_v37, %v1773_v31  ;;  %v1848_v63 = vmul.f32 %v3814_v12, %v1777_v38  ;;  %v1849_v11 = vmul.f32 %v3817_v46, %v1781_v8 }
 0x61c   : > { %v1850_v10 = vmul.f32 %v3821_v25, %v1785_v57  ;;  %v1789_v37 = vrot.slane %v3043_v33, %v3295_v14  ;;  %v1793_v25 = vrot.slane %v3043_v33, %v3299_v17 }
 0x61d   : > { %1879 = vperm.xlu0 %2944, %v1846_v47   ;;  %1882 = vperm.xlu1 %2945, %v1847_v1  }
 0x61e   : > { %v1761_v2 = vpop.xlane.xlu1 %1760  ;;  %v1851_v61 = vmul.f32 %v3833_v22, %v1789_v37 }
 0x61f   : > { %3044 = vrcp.f32 %v1761_v2 }
 0x621   : > { %1885 = vperm.xlu0 %2944, %v1848_v63  }
 0x625   : > { %1888 = vperm.xlu0 %2944, %v1849_v11  }
 0x629   : > { %v3045_v23 = vpop.eup %3044  ;;  %1891 = vperm.xlu0 %2944, %v1850_v10  }
 0x62a   : > { %v1805_v53 = vrot.slane %v3045_v23, %v3285_v6  ;;  %v1801_v12 = vrot.slane %v3045_v23, %v3276_v3  ;;  %v1809_v59 = vrot.slane %v3045_v23, %v3280_v5  ;;  %v1813_v52 = vrot.slane %v3045_v23, %v3287_v7 }
 0x62b   : > { %v1852_v6 = vmul.f32 %v3851_v35, %v1793_v25  ;;  %v1797_v3 = vrot.slane %v3043_v33, %v3301_v18  ;;  %v1817_v5 = vrot.slane %v3045_v23, %v3293_v13  ;;  %v1825_v35 = vrot.slane %v3045_v23, %v3299_v17 }
 0x62c   : > { %v1855_v20 = vmul.f32 %v3845_v15, %v1805_v53  ;;  %v1854_v46 = vmul.f32 %v3843_v9, %v1801_v12  ;;  %v1856_v50 = vmul.f32 %v3853_v60, %v1809_v59  ;;  %v1857_v22 = vmul.f32 %v3860_v24, %v1813_v52 }
 0x62d   : > { %1894 = vperm.xlu0 %2944, %v1851_v61   ;;  %v1853_v9 = vmul.f32 %v3858_v34, %v1797_v3  ;;  %v1858_v15 = vmul.f32 %v3864_v0, %v1817_v5  ;;  %v1821_v60 = vrot.slane %v3045_v23, %v3295_v14  ;;  %v1860_v24 = vmul.f32 %v3870_v27, %v1825_v35 }
 0x62e   : > { %1906 = vperm.xlu1 %2945, %v1855_v20   ;;  %v1829_v13 = vrot.slane %v3045_v23, %v3301_v18 }
 0x62f   : > { %v1859_v7 = vmul.f32 %v3867_v21, %v1821_v60 }
 0x630   : > { %v1861_v28 = vmul.f32 %v3873_v26, %v1829_v13 }
 0x631   : > { %1903 = vperm.xlu0 %2944, %v1854_v46  }
 0x632   : > { %1909 = vperm.xlu1 %2945, %v1856_v50  }
 0x635   : > { %1897 = vperm.xlu0 %2944, %v1852_v6  }
 0x636   : > { %1912 = vperm.xlu1 %2945, %v1857_v22  }
 0x639   : > { %1900 = vperm.xlu0 %2944, %v1853_v9  }
 0x63a   : > { %1915 = vperm.xlu1 %2945, %v1858_v15  }
 0x63e   : > { %1918 = vperm.xlu1 %2945, %v1859_v7  }
 0x642   : > { %1921 = vperm.xlu1 %2945, %v1860_v24  }
 0x646   : > { %1924 = vperm.xlu1 %2945, %v1861_v28  }
 0x69c   : > { %v1880_v34 = vpop.permute.xlu0 %1879  ;;  %v1883_v0 = vpop.permute.xlu1 %1882 }
 0x69d   : > { %v2024_v14 = vmul.f32 %v1880_v34, %v3668_v32  ;;  %v2025_v19 = vmul.f32 %v1883_v0, %v3670_v48  ;;  %v1929_v48 = vrot.slane %v1880_v34, %v3278_v4  ;;  %v1933_v8 = vrot.slane %v1883_v0, %v3278_v4 }
 0x69f   : > { %v2040_v39 = vrot.slane %v2024_v14, 4  ;;  %v2046_v21 = vrot.slane %v2025_v19, 4  ;;  %v1990_v12 = vsel %vm1452_vm1, %v1933_v8, %v1929_v48 }
 0x6a0   : > { %v1886_v43 = vpop.permute.xlu0 %1885 }
 0x6a1   : > { %v2041_v17 = vadd.f32 %v2040_v39, %v2024_v14  ;;  %v2047_v49 = vadd.f32 %v2046_v21, %v2025_v19  ;;  %v2026_v27 = vmul.f32 %v1886_v43, %v3674_v40  ;;  %v1937_v37 = vrot.slane %v1886_v43, %v3278_v4 }
 0x6a3   : > { %v2042_v33 = vrot.slane %v2041_v17, 2  ;;  %v2052_v18 = vrot.slane %v2026_v27, 4  ;;  %v2048_v56 = vrot.slane %v2047_v49, 2 }
 0x6a4   : > { %v1889_v31 = vpop.permute.xlu0 %1888 }
 0x6a5   : > { %v2053_v26 = vadd.f32 %v2052_v18, %v2026_v27  ;;  %v2027_v47 = vmul.f32 %v1889_v31, %v3676_v29  ;;  %v2043_v1 = vadd.f32 %v2042_v33, %v2041_v17  ;;  %v2049_v2 = vadd.f32 %v2048_v56, %v2047_v49 }
 0x6a6   : > { %v1941_v7 = vrot.slane %v1889_v31, %v3278_v4 }
 0x6a7   : > { %v2054_v38 = vrot.slane %v2053_v26, 2  ;;  %v2058_v32 = vrot.slane %v2027_v47, 4  ;;  %v2044_v10 = vrot.slane %v2043_v1, 1  ;;  %v2050_v23 = vrot.slane %v2049_v2, 1 }
 0x6a8   : > { %v1892_v63 = vpop.permute.xlu0 %1891 }
 0x6a9   : > { %v2055_v11 = vadd.f32 %v2054_v38, %v2053_v26  ;;  %v2059_v57 = vadd.f32 %v2058_v32, %v2027_v47  ;;  %v2028_v40 = vmul.f32 %v1892_v63, %v3680_v54  ;;  %v2045_v6 = vadd.f32 %v2044_v10, %v2043_v1 }
 0x6aa   : > { %v1991_v54 = vsel %vm1454_vm2, %v1937_v37, %v1990_v12  ;;  %v2051_v22 = vadd.f32 %v2050_v23, %v2049_v2  ;;  %v1945_v35 = vrot.slane %v1892_v63, %v3278_v4 }
 0x6ab   : > { %v2060_v53 = vrot.slane %v2059_v57, 2  ;;  %v2064_v61 = vrot.slane %v2028_v40, 4  ;;  %v2056_v46 = vrot.slane %v2055_v11, 1  ;;  %v2136_v43 = vmax.f32 %v2045_v6, 0.0 }
 0x6ac   : > { %v1895_v29 = vpop.permute.xlu0 %1894  ;;  %v2137_v17 = vmax.f32 %v2051_v22, 0.0  ;;  %v1992_v18 = vsel %vm1456_vm3, %v1941_v7, %v1991_v54 }
 0x6ad   : > { %v2029_v20 = vmul.f32 %v1895_v29, %v3682_v30  ;;  %v1907_v59 = vpop.permute.xlu1 %1906  ;;  %v2061_v25 = vadd.f32 %v2060_v53, %v2059_v57  ;;  %v2065_v50 = vadd.f32 %v2064_v61, %v2028_v40  ;;  %v2057_v28 = vadd.f32 %v2056_v46, %v2055_v11 }
 0x6ae   : > { %v2033_v52 = vmul.f32 %v1907_v59, %v3694_v36  ;;  %v1949_v1 = vrot.slane %v1895_v29, %v3278_v4  ;;  %v2168_v8 = vsel %vm1452_vm1, %v2137_v17, %v2136_v43  ;;  %v1993_v11 = vsel %vm1458_vm4, %v1945_v35, %v1992_v18 }
 0x6af   : > { %v2070_v3 = vrot.slane %v2029_v20, 4  ;;  %v2062_v5 = vrot.slane %v2061_v25, 1  ;;  %v2066_v9 = vrot.slane %v2065_v50, 2  ;;  %v2138_v47 = vmax.f32 %v2057_v28, 0.0 }
 0x6b0   : > { %v2094_v15 = vrot.slane %v2033_v52, 4  ;;  %v1904_v60 = vpop.permute.xlu0 %1903  ;;  %v1994_v12 = vsel %vm1460_vm5, %v1949_v1, %v1993_v11 }
 0x6b1   : > { %v2071_v30 = vadd.f32 %v2070_v3, %v2029_v20  ;;  %v2032_v24 = vmul.f32 %v1904_v60, %v3692_v55  ;;  %v1910_v13 = vpop.permute.xlu1 %1909  ;;  %v2067_v34 = vadd.f32 %v2066_v9, %v2065_v50  ;;  %v1961_v0 = vrot.slane %v1904_v60, %v3278_v4 }
 0x6b2   : > { %v2095_v36 = vadd.f32 %v2094_v15, %v2033_v52  ;;  %v2063_v14 = vadd.f32 %v2062_v5, %v2061_v25  ;;  %v2034_v21 = vmul.f32 %v1910_v13, %v3698_v44  ;;  %v1965_v55 = vrot.slane %v1907_v59, %v3278_v4 }
 0x6b3   : > { %v2072_v19 = vrot.slane %v2071_v30, 2  ;;  %v2088_v39 = vrot.slane %v2032_v24, 4  ;;  %v2068_v49 = vrot.slane %v2067_v34, 1  ;;  %v1969_v38 = vrot.slane %v1910_v13, %v3278_v4 }
 0x6b4   : > { %v2096_v27 = vrot.slane %v2095_v36, 2  ;;  %v1898_v33 = vpop.permute.xlu0 %1897  ;;  %v2100_v31 = vrot.slane %v2034_v21, 4  ;;  %v2139_v2 = vmax.f32 %v2063_v14, 0.0  ;;  %v1997_v48 = vsel %vm1452_vm1, %v1965_v55, %v1961_v0 }
 0x6b5   : > { %v2089_v56 = vadd.f32 %v2088_v39, %v2032_v24  ;;  %v1913_v26 = vpop.permute.xlu1 %1912  ;;  %v2030_v44 = vmul.f32 %v1898_v33, %v3686_v51  ;;  %v2069_v32 = vadd.f32 %v2068_v49, %v2067_v34  ;;  %v2073_v63 = vadd.f32 %v2072_v19, %v2071_v30 }
 0x6b6   : > { %v2097_v57 = vadd.f32 %v2096_v27, %v2095_v36  ;;  %v2101_v37 = vadd.f32 %v2100_v31, %v2034_v21  ;;  %v1953_v23 = vrot.slane %v1898_v33, %v3278_v4  ;;  %v2035_v53 = vmul.f32 %v1913_v26, %v3700_v58 }
 0x6b7   : > { %v2076_v40 = vrot.slane %v2030_v44, 4  ;;  %v2090_v10 = vrot.slane %v2089_v56, 2  ;;  %v2169_v29 = vsel %vm1454_vm2, %v2138_v47, %v2168_v8  ;;  %v1998_v20 = vsel %vm1454_vm2, %v1969_v38, %v1997_v48 }
 0x6b8   : > { %v1901_v61 = vpop.permute.xlu0 %1900  ;;  %v2170_v46 = vsel %vm1456_vm3, %v2139_v2, %v2169_v29  ;;  %v2140_v25 = vmax.f32 %v2069_v32, 0.0  ;;  %v2074_v50 = vrot.slane %v2073_v63, 1  ;;  %v2106_v52 = vrot.slane %v2035_v53, 4 }
 0x6b9   : > { %v1916_v51 = vpop.permute.xlu1 %1915  ;;  %v2077_v59 = vadd.f32 %v2076_v40, %v2030_v44  ;;  %v2098_v6 = vrot.slane %v2097_v57, 1  ;;  %v1957_v54 = vrot.slane %v1901_v61, %v3278_v4  ;;  %v2031_v3 = vmul.f32 %v1901_v61, %v3688_v41 }
 0x6ba   : > { %v2091_v22 = vadd.f32 %v2090_v10, %v2089_v56  ;;  %v2102_v5 = vrot.slane %v2101_v37, 2  ;;  %v1995_v9 = vsel %vm1462_vm6, %v1953_v23, %v1994_v12  ;;  %v2107_v15 = vadd.f32 %v2106_v52, %v2035_v53 }
 0x6bb   : > { %v2078_v58 = vrot.slane %v2077_v59, 2  ;;  %v1973_v35 = vrot.slane %v1913_v26, %v3278_v4  ;;  %v1996_v30 = vsel %vm1464_vm7, %v1957_v54, %v1995_v9  ;;  %v2082_v24 = vrot.slane %v2031_v3, 4 }
 0x6bc   : > { %v2075_v13 = vadd.f32 %v2074_v50, %v2073_v63  ;;  %v2108_v28 = vrot.slane %v2107_v15, 2  ;;  %2006 = vst.msk [vmem:[%s3982_s22] sm:$0xff] %vm1475_vm8, %v1996_v30  ;;  %v1977_v41 = vrot.slane %v1916_v51, %v3278_v4  ;;  %v2036_v34 = vmul.f32 %v1916_v51, %v3704_v62 }
 0x6bd   : > { %v1919_v60 = vpop.permute.xlu1 %1918  ;;  %v2079_v7 = vadd.f32 %v2078_v58, %v2077_v59  ;;  %v2171_v36 = vsel %vm1458_vm4, %v2140_v25, %v2170_v46  ;;  %v3989_v0 = vadd.f32 %v2098_v6, %v2097_v57  ;;  %v2083_v19 = vadd.f32 %v2082_v24, %v2031_v3 }
 0x6be   : > { %v2092_v39 = vrot.slane %v2091_v22, 1  ;;  %v2103_v21 = vadd.f32 %v2102_v5, %v2101_v37  ;;  %v2112_v43 = vrot.slane %v2036_v34, 4  ;;  %v1981_v17 = vrot.slane %v1919_v60, %v3278_v4 }
 0x6bf   : > { %v2080_v14 = vrot.slane %v2079_v7, 1  ;;  %v1999_v27 = vsel %vm1456_vm3, %v1973_v35, %v1998_v20  ;;  %v2109_v33 = vadd.f32 %v2108_v28, %v2107_v15  ;;  %v2084_v18 = vrot.slane %v2083_v19, 2 }
 0x6c0   : > { %v2037_v55 = vmul.f32 %v1919_v60, %v3706_v45  ;;  %v2141_v56 = vmax.f32 %v2075_v13, 0.0  ;;  %v2000_v31 = vsel %vm1458_vm4, %v1977_v41, %v1999_v27  ;;  %v2113_v26 = vadd.f32 %v2112_v43, %v2036_v34 }
 0x6c1   : > { %v1922_v49 = vpop.permute.xlu1 %1921  ;;  %v2081_v62 = vadd.f32 %v2080_v14, %v2079_v7  ;;  %v2085_v47 = vadd.f32 %v2084_v18, %v2083_v19  ;;  %v2093_v2 = vadd.f32 %v2092_v39, %v2091_v22  ;;  %v2104_v32 = vrot.slane %v2103_v21, 1 }
 0x6c2   : > { %v2118_v1 = vrot.slane %v2037_v55, 4  ;;  %v1985_v38 = vrot.slane %v1922_v49, %v3278_v4  ;;  %v2038_v44 = vmul.f32 %v1922_v49, %v3710_v16  ;;  %v2114_v63 = vrot.slane %v2113_v26, 2 }
 0x6c3   : > { %v2001_v48 = vsel %vm1460_vm5, %v1981_v17, %v2000_v31  ;;  %v2110_v11 = vrot.slane %v2109_v33, 1  ;;  %v2086_v57 = vrot.slane %v2085_v47, 1  ;;  %v2142_v10 = vmax.f32 %v2081_v62, 0.0 }
 0x6c4   : > { %v2119_v45 = vadd.f32 %v2118_v1, %v2037_v55  ;;  %v2124_v40 = vrot.slane %v2038_v44, 4  ;;  %v2115_v37 = vadd.f32 %v2114_v63, %v2113_v26  ;;  %v2002_v16 = vsel %vm1462_vm6, %v1985_v38, %v2001_v48 }
 0x6c5   : > { %v1925_v8 = vpop.permute.xlu1 %1924  ;;  %v2087_v61 = vadd.f32 %v2086_v57, %v2085_v47  ;;  %v2172_v12 = vsel %vm1460_vm5, %v2141_v56, %v2171_v36  ;;  %v2105_v25 = vadd.f32 %v2104_v32, %v2103_v21  ;;  %v2111_v58 = vadd.f32 %v2110_v11, %v2109_v33 }
 0x6c6   : > { %v1989_v23 = vrot.slane %v1925_v8, %v3278_v4  ;;  %v2039_v53 = vmul.f32 %v1925_v8, %v3712_v42  ;;  %v2120_v51 = vrot.slane %v2119_v45, 2  ;;  %v2125_v29 = vadd.f32 %v2124_v40, %v2038_v44 }
 0x6c7   : > { %v2116_v20 = vrot.slane %v2115_v37, 1  ;;  %v2143_v50 = vmax.f32 %v2087_v61, 0.0  ;;  %v2144_v4 = vmax.f32 %v2093_v2, 0.0  ;;  %v2173_v42 = vsel %vm1462_vm6, %v2142_v10, %v2172_v12 }
 0x6c8   : > { %v2003_v59 = vsel %vm1464_vm7, %v1989_v23, %v2002_v16  ;;  %v2130_v46 = vrot.slane %v2039_v53, 4  ;;  %v2121_v52 = vadd.f32 %v2120_v51, %v2119_v45  ;;  %v2126_v6 = vrot.slane %v2125_v29, 2 }
 0x6c9   : > { %2007 = vst.msk [vmem:[%s3982_s22 + $0x8] sm:$0xff] %vm1475_vm8, %v2003_v59  ;;  %v2174_v3 = vsel %vm1464_vm7, %v2143_v50, %v2173_v42  ;;  %v2117_v22 = vadd.f32 %v2116_v20, %v2115_v37  ;;  %v2145_v15 = vmax.f32 %v3989_v0, 0.0  ;;  %v2146_v7 = vmax.f32 %v2105_v25, 0.0 }
 0x6ca   : > { %v2131_v54 = vadd.f32 %v2130_v46, %v2039_v53  ;;  %v2122_v5 = vrot.slane %v2121_v52, 1  ;;  %v2127_v9 = vadd.f32 %v2126_v6, %v2125_v29  ;;  %2184 = vst [vmem:[%s4009_s24] sm:$0xff] %v2174_v3  ;;  %v2147_v13 = vmax.f32 %v2111_v58, 0.0 }
 0x6cb   : > { %v2175_v24 = vsel %vm1452_vm1, %v2145_v15, %v2144_v4  ;;  %v2148_v41 = vmax.f32 %v2117_v22, 0.0 }
 0x6cc   : > { %v2132_v60 = vrot.slane %v2131_v54, 2  ;;  %v2123_v35 = vadd.f32 %v2122_v5, %v2121_v52  ;;  %v2128_v30 = vrot.slane %v2127_v9, 1  ;;  %v2176_v0 = vsel %vm1454_vm2, %v2146_v7, %v2175_v24 }
 0x6cd   : > { %v2177_v39 = vsel %vm1456_vm3, %v2147_v13, %v2176_v0 }
 0x6ce   : > { %v2133_v28 = vadd.f32 %v2132_v60, %v2131_v54  ;;  %v2129_v34 = vadd.f32 %v2128_v30, %v2127_v9  ;;  %v2149_v36 = vmax.f32 %v2123_v35, 0.0  ;;  %v2178_v43 = vsel %vm1458_vm4, %v2148_v41, %v2177_v39 }
 0x6d0   : > { %v2134_v14 = vrot.slane %v2133_v28, 1  ;;  %v2150_v19 = vmax.f32 %v2129_v34, 0.0  ;;  %v2179_v17 = vsel %vm1460_vm5, %v2149_v36, %v2178_v43 }
 0x6d1   : > { %2197 = sbr.rel (!%p3261_p5) target bundleno = 1780 (0x6f4), region = 52 }
 0x6d2   : > { %v2135_v21 = vadd.f32 %v2134_v14, %v2133_v28  ;;  %v2180_v27 = vsel %vm1462_vm6, %v2150_v19, %v2179_v17 }
 0x6d4   : > { %v2151_v49 = vmax.f32 %v2135_v21, 0.0 }
 0x6d6   : > { %v2181_v33 = vsel %vm1464_vm7, %v2151_v49, %v2180_v27 }
 0x6d7   : > { %2185 = vst [vmem:[%s4009_s24 + $0x8] sm:$0xff] %v2181_v33 }
 0x6d8   : > { %s4132_s26 = smov (!%p2200_p12, %s2199_s26), 2 }
 0x6d9   : > { %s4027_s10 = sshll.u32 %s4132_s26, 7 }
 0x6da   : > { %s2204_s12 = ssub.s32 256, %s4027_s10 }
 0x6db   : > { %2205 = vsyncadd %s4022_s25, %s2204_s12  ;;  %p2509_p13 = scmp.ne.s32.totalorder %s4027_s10, 0  ;;  %s2529_s13 = sshll.u32 %s3244_s9, 8 }
 0x6dc   : > { %s4036_s20 = scalar_lea.hbm %s4121_s7, %s2529_s13  ;;  %s2210_s21 = sshll.u32 %s4009_s24, 4  ;;  %s4039_s21 = int_to_ptr.vmem [resolvable:$true] %s2210_s21 }
 0x6dd   : > { %s3046_s26 = scalar_lea.vmem %s4039_s21, %s4027_s10  ;;  %s3175_s12 = smov [#allocation2]  }
 0x6de   : > { %p3047_p0 = scmp.ne.s32.totalorder %s4039_s21, %s3046_s26  ;;  %s3050_s0 = sshll.u32 %s3175_s12, 4  ;;  %s3051_s0 = int_to_ptr.vmem [resolvable:$false] %s3050_s0 }
 0x6df   : > { %s3052_s9 = scalar_lea.vmem %s3051_s0, 512  ;;  %p3053_p3 = scmp.lt.s32.totalorder %s4039_s21, %s3051_s0 }
 0x6e0   : > { %p3048_p1 = pnand %p3047_p0, %p2509_p13  ;;  %p3054_p4 = scmp.lt.s32.totalorder %s3052_s9, %s3046_s26 }
 0x6e2   : > { %p3049_p2 = pneg %p3048_p1  ;;  %p3055_p7 = por %p3054_p4, %p3053_p3 }
 0x6e4   : > { %p3056_p8 = pnand %p3055_p7, %p3049_p2 }
 0x6e6   : > { %3059 = shalt.err (!%p3056_p8)
}
 0x6e7   : > { %s3060_s24 = scalar_lea.hbm %s4036_s20, %s4027_s10  ;;  %s3064_s19 = scalar_lea.hbm %s4121_s7, 896 }
 0x6e8   : > { %p3061_p9 = scmp.ne.s32.totalorder %s4036_s20, %s3060_s24  ;;  %p3065_p12 = scmp.lt.u32.totalorder %s4036_s20, %s4121_s7 }
 0x6e9   : > { %p3066_p0 = scmp.lt.u32.totalorder %s3064_s19, %s3060_s24  ;;  %p3068_p2 = scmp.lt.u32.totalorder %s3060_s24, %s4036_s20 }
 0x6ea   : > { %p3062_p10 = pnand %p3061_p9, %p2509_p13 }
 0x6eb   : > { %p3067_p1 = por %p3066_p0, %p3065_p12 }
 0x6ec   : > { %p3063_p11 = pneg %p3062_p10 }
 0x6ed   : > { %p3069_p3 = por %p3068_p2, %p3067_p1 }
 0x6ef   : > { %p3070_p4 = pnand %p3069_p3, %p3063_p11 }
 0x6f1   : > { %3073 = shalt.err (!%p3070_p4)
}
 0x6f2   : > { %s3176_s12 = smov 128   ;;  %s3177_s9 = smov 8  }
 0x6f3   : > { %2216 = dma.vmem_to_hbm [thread:$0]  (%p2509_p13), %s4039_s21, %s4027_s10, %s4036_s20, %s4022_s25, %s3176_s12, %s3176_s12, %s3177_s9  }
 0x6f4 PF: > { %2219 = sbr.rel (!%p3261_p5) target bundleno = 1836 (0x72c), region = 56  ;;  %s2221_s13 = ssub.s32 (%p3261_p5), 7, %s3272_s17 }
 0x6f5   : > { %s4073_s19 = scalar_lea.vmem (%p3261_p5), %s4122_s8, %s3603_s23   ;;  %p2222_p7 = scmp.lt.s32.totalorder (%p3261_p5), %s2221_s13, 2 }
 0x6fb   : > { %s4134_s13 = smov (!%p2222_p7, %s2221_s13), 2 }
 0x6fc   : > { %s2514_s0 = sshll.u32 %s4134_s13, 7 }
 0x6fd   : > { %p2517_p8 = scmp.eq.s32.totalorder %s2514_s0, 0 }
 0x6fe   : > { %s4079_s25 = sshrl.u32 (!%p2517_p8), %s4134_s13, 1 }
 0x6ff   : > { %2230 = sbr.rel (%p2517_p8) target bundleno = 1836 (0x72c), region = 60  ;;  %p2518_p5 = scmp.le.s32.totalorder (!%p2517_p8), %s4079_s25, 0 }
 0x706   : > { %2417 = sbr.rel (%p2518_p5) target bundleno = 1815 (0x717), region = 152  ;;  %s3142_s15 = smov (!%p2518_p5), %s4073_s19  }
 0x707   : > { %s3146_s17 = smov (!%p2518_p5), %s3982_s22   ;;  %s3150_s10 = smov (!%p2518_p5), 0  }
 0x708   : > { %s3154_s23 = smov (!%p2518_p5), 0  }
 0x70d LB: >> { %v2294_v18 = vld [vmem:[%s3148_s17] sm:$0xff]  ;;  %v2296_v55 = vld [vmem:[%s3148_s17 + $0x8] sm:$0xff]  ;;  %s2298_s20 = sadd.s32 1, %s3152_s10  ;;  %s2288_s23 = sadd.s32 1, %s3156_s23   ;;  %s3156_s23 = sphi %s3154_s23, %s2288_s23   ;;  %s3152_s10 = sphi %s3150_s10, %s3151_s10   ;;  %s3148_s17 = sphi %s3146_s17, %s2303_s17   ;;  %s3144_s15 = sphi %s3142_s15, %s2304_s15  }
 0x70e   : >> { %2295 = vst [vmem:[%s3144_s15] sm:$0xff] %v2294_v18  ;;  %2297 = vst [vmem:[%s3144_s15 + $0x8] sm:$0xff] %v2296_v55  ;;  %p2299_p13 = scmp.ge.s32.totalorder %s2298_s20, %s4079_s25  ;;  %p2287_p9 = scmp.ge.s32.totalorder %s2288_s23, %s4079_s25 }
 0x710   : >> { %s4136_s20 = smov (%p2299_p13, %s2298_s20), 0  ;;  %2290 = sbr.rel (!%p2287_p9) target bundleno = 1805 (0x70d), region = 158 }
 0x711   : >> { %s2519_s21 = sshll.u32 %s4136_s20, 4  ;;  %s3151_s10 = smov %s4136_s20  }
 0x712   : >> { %s2303_s17 = scalar_lea.vmem %s3982_s22, %s2519_s21 [#allocation4]   ;;  %s2304_s15 = scalar_lea.vmem %s4073_s19, %s2519_s21  }
 0x717 PF: > { %s4089_s26 = sand.u32 1, %s4134_s13   ;;  %s2531_s12 = sshll.u32 %s4079_s25, 4 }
 0x718   : > { %s2309_s9 = scalar_lea.vmem %s3982_s22, %s2531_s12 [#allocation4]   ;;  %s2311_s24 = scalar_lea.vmem %s4073_s19, %s2531_s12  }
 0x719   : > { %p2524_p10 = scmp.le.s32.totalorder %s4089_s26, 0 }
 0x71a   : > { %s3158_s18 = smov (!%p2524_p10), %s2311_s24   ;;  %s3162_s0 = smov (!%p2524_p10), %s2309_s9  }
 0x71b   : > { %2431 = sbr.rel (%p2524_p10) target bundleno = 1836 (0x72c), region = 163  ;;  %s3166_s15 = smov (!%p2524_p10), 0  }
 0x71c   : > { %s3170_s17 = smov (!%p2524_p10), 0  }
 0x722 LB: >> { %v2321_v56 = vld [vmem:[%s3164_s0] sm:$0xff]  ;;  %s2323_s13 = sadd.s32 1, %s3168_s15  ;;  %s2315_s17 = sadd.s32 1, %s3172_s17   ;;  %s3172_s17 = sphi %s3170_s17, %s2315_s17   ;;  %s3168_s15 = sphi %s3166_s15, %s3167_s15   ;;  %s3164_s0 = sphi %s3162_s0, %s2328_s0   ;;  %s3160_s18 = sphi %s3158_s18, %s2329_s18  }
 0x723   : >> { %2322 = vst [vmem:[%s3160_s18] sm:$0xff] %v2321_v56  ;;  %p2324_p11 = scmp.ge.s32.totalorder %s2323_s13, %s4089_s26  ;;  %p2314_p12 = scmp.ge.s32.totalorder %s2315_s17, %s4089_s26 }
 0x725   : >> { %s4138_s13 = smov (%p2324_p11, %s2323_s13), 0  ;;  %2317 = sbr.rel (!%p2314_p12) target bundleno = 1826 (0x722), region = 169 }
 0x726   : >> { %s2525_s22 = sshll.u32 %s4138_s13, 3  ;;  %s3167_s15 = smov %s4138_s13  }
 0x727   : >> { %s2328_s0 = scalar_lea.vmem %s2309_s9, %s2525_s22 [#allocation4]   ;;  %s2329_s18 = scalar_lea.vmem %s2311_s24, %s2525_s22  }
 0x72c PF: > { %p2844_p0 = scmp.ge.s32.totalorder %s3140_s30, 2  ;;  %s2341_s19 = sand.u32 1, %s3128_s27  }
 0x72d   : > { %s2342_s25 = scalar_lea.sflag [#allocation3], %s2341_s19 }
 0x72e   : > { %p2841_p1 = pnand %p2844_p0, %p3265_p6 }
 0x730   : > { %3123 = dma.done.wait (!%p2841_p1), %s2342_s25, 256  }
 0x731   : > { %3125 = vsyncadd (!%p2841_p1), %s2342_s25, 4294967040  ;;  %p19_p2 = scmp.ge.s32.totalorder %s3248_s11, 6   ;;  %s4127_s27 = smov %s3132_s28 }
 0x732   : > { %s4128_s28 = smov %s3136_s29  ;;  %s4129_s29 = smov %s3259_s14 }
 0x733   : > { %s4130_s30 = smov %s3248_s11  ;;  %21 = sbr.rel (!%p19_p2) target bundleno = 5 (0x5), region = 180 }
 0x73a   :  { %2354 = vsyncpa [#allocation3], 1 }
 0x73b   :  { %2356 = vsyncpa [#allocation3 + $0x1], 1 }

</bundles_post_ra>
